<compile_context>
chip_gen: v6e
topology: v6e:2x2x1
jax: 0.10.0
libtpu: 0.0.40
codegen_flags: <defaults>
</compile_context>

<pallas_src>
import functools

import jax
import jax.numpy as jnp
import numpy as np
from jax.experimental import pallas as pl
from jax.experimental.pallas import tpu as pltpu


def _gen_loss_kernel(w_ref, b_ref, img_ref, tgt_ref, out_ref, logits_scr,
                     *, C, K, H, W, W_pad):
    """Fused 3x3 conv (seg head) + masked cross-entropy partial reduction.

    w_ref     : SMEM (K*C*9,) f32    conv weights, flattened row-major (K, C, 3, 3)
    b_ref     : SMEM (K,)     f32    conv bias
    img_ref   : VMEM (1, C, H, W_pad) f32   image of the current batch element
    tgt_ref   : VMEM (1, H, W_pad)    i32   targets (< 0 means ignore; pad cols are -1)
    out_ref   : VMEM (1, 1, 128)      f32   lane 0 = CE numerator, lane 1 = valid count
    logits_scr: VMEM (K, H, W_pad)    f32   scratch for the K logit planes
    """
    f32 = jnp.float32

    # Boundary masks for the "SAME" zero-halo, hoisted out of the channel loop.
    row_idx = jax.lax.broadcasted_iota(jnp.int32, (H, W_pad), 0)
    col_idx = jax.lax.broadcasted_iota(jnp.int32, (H, W_pad), 1)
    first_row = row_idx == 0
    last_row = row_idx == H - 1
    first_col = col_idx == 0
    last_col = col_idx == W - 1

    # Initialize the K logit planes with the bias.
    for k in range(K):
        logits_scr[k] = jnp.full((H, W_pad), b_ref[k], dtype=f32)

    # 3x3 conv as 9 shifted slabs per channel (computed once, reused across K).
    for c in range(C):
        x = img_ref[0, c]                                                  # (H, W_pad)
        # Column (lane) shifts: xl[.,w] = x[.,w-1], xr[.,w] = x[.,w+1], zero at edges.
        xl = jnp.where(first_col, 0.0, pltpu.roll(x, 1, axis=1))
        xr = jnp.where(last_col, 0.0, pltpu.roll(x, W_pad - 1, axis=1))
        cols = (xl, x, xr)                                                 # dw = 0,1,2
        # Row (sublane) shifts of each column-shifted slab.
        shifts = []
        for dw in range(3):
            base = cols[dw]
            up = jnp.where(first_row, 0.0, pltpu.roll(base, 1, axis=0))    # x[h-1]
            dn = jnp.where(last_row, 0.0, pltpu.roll(base, H - 1, axis=0)) # x[h+1]
            shifts.append((up, base, dn))                                  # dh = 0,1,2
        # Accumulate into the K logit planes (scratch RMW -> bounded vreg pressure).
        for k in range(K):
            acc = logits_scr[k]
            for dh in range(3):
                for dw in range(3):
                    w_s = w_ref[((k * C + c) * 3 + dh) * 3 + dw]           # SMEM scalar
                    acc = acc + w_s * shifts[dw][dh]
            logits_scr[k] = acc

    # Numerically stable log-sum-exp across the K planes.
    m = logits_scr[0]
    for k in range(1, K):
        m = jnp.maximum(m, logits_scr[k])
    se = jnp.exp(logits_scr[0] - m)
    for k in range(1, K):
        se = se + jnp.exp(logits_scr[k] - m)
    lse = m + jnp.log(se)

    t = tgt_ref[0]                                                         # (H, W_pad) i32
    picked = jnp.zeros((H, W_pad), f32)
    for k in range(K):
        picked = picked + jnp.where(t == k, logits_scr[k], 0.0)
    valid = (t >= 0).astype(f32)

    num = jnp.sum((lse - picked) * valid)
    den = jnp.sum(valid)

    lane = jax.lax.broadcasted_iota(jnp.int32, (1, 128), 1)
    out_ref[0] = jnp.where(lane == 0, num, jnp.where(lane == 1, den, 0.0))


def generator_forward(image_nchw, target, conv_w, conv_b, alpha=1.0, beta=1.0):
    """Generator.forward(): loss + alpha * (cost + beta * diff_cost)."""
    B, C, H, W = image_nchw.shape
    K = conv_w.shape[0]

    # adapt(): dummy super-class version -> (self.image, 0.0)
    cost = jnp.float32(0.0)
    # _difference_costs(): previous == [] -> 0.0
    diff_cost = jnp.float32(0.0)

    # Lane-dense layout: pad W to a multiple of 128 (image with 0, target with -1).
    W_pad = max(128, ((W + 127) // 128) * 128)
    img = image_nchw.astype(jnp.float32)
    tgt = target.astype(jnp.int32)
    if W_pad != W:
        img = jnp.pad(img, ((0, 0), (0, 0), (0, 0), (0, W_pad - W)))
        tgt = jnp.pad(tgt, ((0, 0), (0, 0), (0, W_pad - W)), constant_values=-1)

    w_flat = conv_w.reshape(-1).astype(jnp.float32)                        # (K*C*9,)
    b_vec = conv_b.reshape(-1).astype(jnp.float32)                         # (K,)

    # Generation-aware VMEM budget from the actual block sizes (+ headroom).
    img_blk = C * H * W_pad * 4
    tgt_blk = H * W_pad * 4
    scr_blk = K * H * W_pad * 4
    need = 2 * img_blk + 2 * tgt_blk + scr_blk + (4 << 20)
    try:
        phys_vmem = pltpu.get_tpu_info().vmem_capacity_bytes
    except Exception:  # noqa: BLE001 - fall back to the smallest generation (v7x: 64 MiB)
        phys_vmem = 64 << 20
    vmem_limit = int(min(max(need, 16 << 20), int(phys_vmem * 0.9)))

    kernel = functools.partial(_gen_loss_kernel, C=C, K=K, H=H, W=W, W_pad=W_pad)

    partials = pl.pallas_call(
        kernel,
        out_shape=jax.ShapeDtypeStruct((B, 1, 128), jnp.float32),
        grid=(B,),
        in_specs=[
            pl.BlockSpec((K * C * 9,), lambda b: (0,),
                         memory_space=pltpu.MemorySpace.SMEM),
            pl.BlockSpec((K,), lambda b: (0,),
                         memory_space=pltpu.MemorySpace.SMEM),
            pl.BlockSpec((1, C, H, W_pad), lambda b: (b, 0, 0, 0)),
            pl.BlockSpec((1, H, W_pad), lambda b: (b, 0, 0)),
        ],
        out_specs=pl.BlockSpec((1, 1, 128), lambda b: (b, 0, 0)),
        scratch_shapes=[pltpu.VMEM((K, H, W_pad), jnp.float32)],
        compiler_params=pltpu.CompilerParams(
            dimension_semantics=("parallel",),
            vmem_limit_bytes=vmem_limit,
        ),
    )(w_flat, b_vec, img, tgt)

    num = jnp.sum(partials[:, 0, 0])
    den = jnp.sum(partials[:, 0, 1])
    # Guard the divide: all-ignored targets give 0 instead of NaN.
    loss = num / jnp.maximum(den, 1.0)

    return loss + alpha * (cost + beta * diff_cost)


if __name__ == "__main__":
    key = jax.random.PRNGKey(0)
    k1, k2, k3, k4, k5 = jax.random.split(key, 5)

    # small shapes consistent with (B, C, W, H) image / (B, W, H) target
    B, C, H, W, K = 2, 4, 16, 16, 2
    image = jax.random.normal(k1, (B, C, H, W), jnp.float32)
    target = jax.random.randint(k2, (B, H, W), 0, K)
    # mark some pixels ignored (< 0) to exercise the masked CE
    target = jnp.where(jax.random.uniform(k5, (B, H, W)) < 0.15, -1, target)
    # deterministic synthetic "model": Conv2d(C, K, kernel_size=3, padding=1)
    conv_w = 0.1 * jax.random.normal(k3, (K, C, 3, 3), jnp.float32)
    conv_b = 0.01 * jax.random.normal(k4, (K,), jnp.float32)

    out = generator_forward(image, target, conv_w, conv_b, alpha=1.0, beta=1.0)
    out = jax.block_until_ready(out)

    # pure-JAX reference of the same forward pass
    logits_ref = jax.lax.conv_general_dilated(
        image, conv_w, window_strides=(1, 1), padding="SAME",
        dimension_numbers=("NCHW", "OIHW", "NCHW"),
        precision=jax.lax.Precision.HIGHEST) + conv_b[None, :, None, None]
    logp = jax.nn.log_softmax(logits_ref, axis=1)
    picked = jnp.take_along_axis(logp, jnp.maximum(target, 0)[:, None], axis=1)[:, 0]
    valid = (target >= 0).astype(jnp.float32)
    loss_ref = -(picked * valid).sum() / jnp.maximum(valid.sum(), 1.0)
    ref = loss_ref + 1.0 * (0.0 + 1.0 * 0.0)

    assert np.allclose(np.asarray(out), np.asarray(ref), rtol=1e-4, atol=1e-5), (out, ref)
    print("KERNEL_OK")
</pallas_src>

<mosaic_0001>
module attributes {stable_mosaic.version = 11 : i64} {
  func.func @_gen_loss_kernel(%arg0: i32, %arg1: memref<72xf32, #tpu.memory_space<smem>>, %arg2: memref<2xf32, #tpu.memory_space<smem>>, %arg3: memref<1x4x16x128xf32, #tpu.memory_space<vmem>>, %arg4: memref<1x16x128xi32, #tpu.memory_space<vmem>>, %arg5: memref<1x1x128xf32, #tpu.memory_space<vmem>>, %arg6: memref<2x16x128xf32, #tpu.memory_space<vmem>>) attributes {dimension_semantics = [#tpu.dimension_semantics<parallel>], iteration_bounds = array<i64: 2>, scalar_prefetch = 0 : i64, scratch_operands = 1 : i64, tpu.core_type = #tpu.core_type<tc>, window_params = [{transform_indices = @transform_0, window_bounds = array<i64: 72>}, {transform_indices = @transform_1, window_bounds = array<i64: 2>}, {transform_indices = @transform_2, window_bounds = array<i64: 1, 4, 16, 128>}, {transform_indices = @transform_3, window_bounds = array<i64: 1, 16, 128>}, {transform_indices = @transform_4, window_bounds = array<i64: 1, 1, 128>}]} {
    %0 = tpu.iota {dimensions = array<i32: 0>} : vector<16x128xi32>
    %1 = tpu.iota {dimensions = array<i32: 1>} : vector<16x128xi32>
    %c0_i32 = arith.constant 0 : i32
    %2 = vector.broadcast %c0_i32 : i32 to vector<16x128xi32>
    %3 = arith.cmpi eq, %0, %2 : vector<16x128xi32>
    %c15_i32 = arith.constant 15 : i32
    %4 = vector.broadcast %c15_i32 : i32 to vector<16x128xi32>
    %5 = arith.cmpi eq, %0, %4 : vector<16x128xi32>
    %c0_i32_0 = arith.constant 0 : i32
    %6 = vector.broadcast %c0_i32_0 : i32 to vector<16x128xi32>
    %7 = arith.cmpi eq, %1, %6 : vector<16x128xi32>
    %c15_i32_1 = arith.constant 15 : i32
    %8 = vector.broadcast %c15_i32_1 : i32 to vector<16x128xi32>
    %9 = arith.cmpi eq, %1, %8 : vector<16x128xi32>
    %c0 = arith.constant 0 : index
    %10 = memref.load %arg2[%c0] : memref<2xf32, #tpu.memory_space<smem>>
    %11 = vector.broadcast %10 : f32 to vector<16x128xf32>
    %c0_2 = arith.constant 0 : index
    %c0_3 = arith.constant 0 : index
    %c0_4 = arith.constant 0 : index
    %12 = vector.load %arg6[%c0_2, %c0_3, %c0_4] : memref<2x16x128xf32, #tpu.memory_space<vmem>>, vector<1x16x128xf32>
    %13 = vector.shape_cast %12 : vector<1x16x128xf32> to vector<16x128xf32>
    %14 = vector.shape_cast %11 : vector<16x128xf32> to vector<1x16x128xf32>
    tpu.vector_store %arg6[%c0_2, %c0_3, %c0_4], %14 {strides = array<i32>} : memref<2x16x128xf32, #tpu.memory_space<vmem>>, vector<1x16x128xf32>,
    %c1 = arith.constant 1 : index
    %15 = memref.load %arg2[%c1] : memref<2xf32, #tpu.memory_space<smem>>
    %16 = vector.broadcast %15 : f32 to vector<16x128xf32>
    %c1_5 = arith.constant 1 : index
    %c0_6 = arith.constant 0 : index
    %c0_7 = arith.constant 0 : index
    %17 = vector.load %arg6[%c1_5, %c0_6, %c0_7] : memref<2x16x128xf32, #tpu.memory_space<vmem>>, vector<1x16x128xf32>
    %18 = vector.shape_cast %17 : vector<1x16x128xf32> to vector<16x128xf32>
    %19 = vector.shape_cast %16 : vector<16x128xf32> to vector<1x16x128xf32>
    tpu.vector_store %arg6[%c1_5, %c0_6, %c0_7], %19 {strides = array<i32>} : memref<2x16x128xf32, #tpu.memory_space<vmem>>, vector<1x16x128xf32>,
    %c0_8 = arith.constant 0 : index
    %c0_9 = arith.constant 0 : index
    %c0_10 = arith.constant 0 : index
    %c0_11 = arith.constant 0 : index
    %20 = vector.load %arg3[%c0_8, %c0_9, %c0_10, %c0_11] : memref<1x4x16x128xf32, #tpu.memory_space<vmem>>, vector<1x1x16x128xf32>
    %21 = vector.shape_cast %20 : vector<1x1x16x128xf32> to vector<16x128xf32>
    %c1_i32 = arith.constant 1 : i32
    %22 = tpu.dynamic_rotate %21 by %c1_i32 dim 1 : vector<16x128xf32>, i32 -> vector<16x128xf32>
    %cst = arith.constant 0.000000e+00 : f32
    %23 = vector.broadcast %cst : f32 to vector<16x128xf32>
    %24 = arith.select %7, %23, %22 : vector<16x128xi1>, vector<16x128xf32>
    %c127_i32 = arith.constant 127 : i32
    %25 = tpu.dynamic_rotate %21 by %c127_i32 dim 1 : vector<16x128xf32>, i32 -> vector<16x128xf32>
    %cst_12 = arith.constant 0.000000e+00 : f32
    %26 = vector.broadcast %cst_12 : f32 to vector<16x128xf32>
    %27 = arith.select %9, %26, %25 : vector<16x128xi1>, vector<16x128xf32>
    %c1_i32_13 = arith.constant 1 : i32
    %28 = tpu.dynamic_rotate %24 by %c1_i32_13 dim 0 : vector<16x128xf32>, i32 -> vector<16x128xf32>
    %cst_14 = arith.constant 0.000000e+00 : f32
    %29 = vector.broadcast %cst_14 : f32 to vector<16x128xf32>
    %30 = arith.select %3, %29, %28 : vector<16x128xi1>, vector<16x128xf32>
    %c15_i32_15 = arith.constant 15 : i32
    %31 = tpu.dynamic_rotate %24 by %c15_i32_15 dim 0 : vector<16x128xf32>, i32 -> vector<16x128xf32>
    %cst_16 = arith.constant 0.000000e+00 : f32
    %32 = vector.broadcast %cst_16 : f32 to vector<16x128xf32>
    %33 = arith.select %5, %32, %31 : vector<16x128xi1>, vector<16x128xf32>
    %c1_i32_17 = arith.constant 1 : i32
    %34 = tpu.dynamic_rotate %21 by %c1_i32_17 dim 0 : vector<16x128xf32>, i32 -> vector<16x128xf32>
    %cst_18 = arith.constant 0.000000e+00 : f32
    %35 = vector.broadcast %cst_18 : f32 to vector<16x128xf32>
    %36 = arith.select %3, %35, %34 : vector<16x128xi1>, vector<16x128xf32>
    %c15_i32_19 = arith.constant 15 : i32
    %37 = tpu.dynamic_rotate %21 by %c15_i32_19 dim 0 : vector<16x128xf32>, i32 -> vector<16x128xf32>
    %cst_20 = arith.constant 0.000000e+00 : f32
    %38 = vector.broadcast %cst_20 : f32 to vector<16x128xf32>
    %39 = arith.select %5, %38, %37 : vector<16x128xi1>, vector<16x128xf32>
    %c1_i32_21 = arith.constant 1 : i32
    %40 = tpu.dynamic_rotate %27 by %c1_i32_21 dim 0 : vector<16x128xf32>, i32 -> vector<16x128xf32>
    %cst_22 = arith.constant 0.000000e+00 : f32
    %41 = vector.broadcast %cst_22 : f32 to vector<16x128xf32>
    %42 = arith.select %3, %41, %40 : vector<16x128xi1>, vector<16x128xf32>
    %c15_i32_23 = arith.constant 15 : i32
    %43 = tpu.dynamic_rotate %27 by %c15_i32_23 dim 0 : vector<16x128xf32>, i32 -> vector<16x128xf32>
    %cst_24 = arith.constant 0.000000e+00 : f32
    %44 = vector.broadcast %cst_24 : f32 to vector<16x128xf32>
    %45 = arith.select %5, %44, %43 : vector<16x128xi1>, vector<16x128xf32>
    %c0_25 = arith.constant 0 : index
    %c0_26 = arith.constant 0 : index
    %c0_27 = arith.constant 0 : index
    %46 = vector.load %arg6[%c0_25, %c0_26, %c0_27] : memref<2x16x128xf32, #tpu.memory_space<vmem>>, vector<1x16x128xf32>
    %47 = vector.shape_cast %46 : vector<1x16x128xf32> to vector<16x128xf32>
    %c0_28 = arith.constant 0 : index
    %48 = memref.load %arg1[%c0_28] : memref<72xf32, #tpu.memory_space<smem>>
    %49 = vector.broadcast %48 : f32 to vector<16x128xf32>
    %50 = arith.mulf %49, %30 : vector<16x128xf32>
    %51 = arith.addf %47, %50 : vector<16x128xf32>
    %c1_29 = arith.constant 1 : index
    %52 = memref.load %arg1[%c1_29] : memref<72xf32, #tpu.memory_space<smem>>
    %53 = vector.broadcast %52 : f32 to vector<16x128xf32>
    %54 = arith.mulf %53, %36 : vector<16x128xf32>
    %55 = arith.addf %51, %54 : vector<16x128xf32>
    %c2 = arith.constant 2 : index
    %56 = memref.load %arg1[%c2] : memref<72xf32, #tpu.memory_space<smem>>
    %57 = vector.broadcast %56 : f32 to vector<16x128xf32>
    %58 = arith.mulf %57, %42 : vector<16x128xf32>
    %59 = arith.addf %55, %58 : vector<16x128xf32>
    %c3 = arith.constant 3 : index
    %60 = memref.load %arg1[%c3] : memref<72xf32, #tpu.memory_space<smem>>
    %61 = vector.broadcast %60 : f32 to vector<16x128xf32>
    %62 = arith.mulf %61, %24 : vector<16x128xf32>
    %63 = arith.addf %59, %62 : vector<16x128xf32>
    %c4 = arith.constant 4 : index
    %64 = memref.load %arg1[%c4] : memref<72xf32, #tpu.memory_space<smem>>
    %65 = vector.broadcast %64 : f32 to vector<16x128xf32>
    %66 = arith.mulf %65, %21 : vector<16x128xf32>
    %67 = arith.addf %63, %66 : vector<16x128xf32>
    %c5 = arith.constant 5 : index
    %68 = memref.load %arg1[%c5] : memref<72xf32, #tpu.memory_space<smem>>
    %69 = vector.broadcast %68 : f32 to vector<16x128xf32>
    %70 = arith.mulf %69, %27 : vector<16x128xf32>
    %71 = arith.addf %67, %70 : vector<16x128xf32>
    %c6 = arith.constant 6 : index
    %72 = memref.load %arg1[%c6] : memref<72xf32, #tpu.memory_space<smem>>
    %73 = vector.broadcast %72 : f32 to vector<16x128xf32>
    %74 = arith.mulf %73, %33 : vector<16x128xf32>
    %75 = arith.addf %71, %74 : vector<16x128xf32>
    %c7 = arith.constant 7 : index
    %76 = memref.load %arg1[%c7] : memref<72xf32, #tpu.memory_space<smem>>
    %77 = vector.broadcast %76 : f32 to vector<16x128xf32>
    %78 = arith.mulf %77, %39 : vector<16x128xf32>
    %79 = arith.addf %75, %78 : vector<16x128xf32>
    %c8 = arith.constant 8 : index
    %80 = memref.load %arg1[%c8] : memref<72xf32, #tpu.memory_space<smem>>
    %81 = vector.broadcast %80 : f32 to vector<16x128xf32>
    %82 = arith.mulf %81, %45 : vector<16x128xf32>
    %83 = arith.addf %79, %82 : vector<16x128xf32>
    %c0_30 = arith.constant 0 : index
    %c0_31 = arith.constant 0 : index
    %c0_32 = arith.constant 0 : index
    %84 = vector.load %arg6[%c0_30, %c0_31, %c0_32] : memref<2x16x128xf32, #tpu.memory_space<vmem>>, vector<1x16x128xf32>
    %85 = vector.shape_cast %84 : vector<1x16x128xf32> to vector<16x128xf32>
    %86 = vector.shape_cast %83 : vector<16x128xf32> to vector<1x16x128xf32>
    tpu.vector_store %arg6[%c0_30, %c0_31, %c0_32], %86 {strides = array<i32>} : memref<2x16x128xf32, #tpu.memory_space<vmem>>, vector<1x16x128xf32>,
    %c1_33 = arith.constant 1 : index
    %c0_34 = arith.constant 0 : index
    %c0_35 = arith.constant 0 : index
    %87 = vector.load %arg6[%c1_33, %c0_34, %c0_35] : memref<2x16x128xf32, #tpu.memory_space<vmem>>, vector<1x16x128xf32>
    %88 = vector.shape_cast %87 : vector<1x16x128xf32> to vector<16x128xf32>
    %c36 = arith.constant 36 : index
    %89 = memref.load %arg1[%c36] : memref<72xf32, #tpu.memory_space<smem>>
    %90 = vector.broadcast %89 : f32 to vector<16x128xf32>
    %91 = arith.mulf %90, %30 : vector<16x128xf32>
    %92 = arith.addf %88, %91 : vector<16x128xf32>
    %c37 = arith.constant 37 : index
    %93 = memref.load %arg1[%c37] : memref<72xf32, #tpu.memory_space<smem>>
    %94 = vector.broadcast %93 : f32 to vector<16x128xf32>
    %95 = arith.mulf %94, %36 : vector<16x128xf32>
    %96 = arith.addf %92, %95 : vector<16x128xf32>
    %c38 = arith.constant 38 : index
    %97 = memref.load %arg1[%c38] : memref<72xf32, #tpu.memory_space<smem>>
    %98 = vector.broadcast %97 : f32 to vector<16x128xf32>
    %99 = arith.mulf %98, %42 : vector<16x128xf32>
    %100 = arith.addf %96, %99 : vector<16x128xf32>
    %c39 = arith.constant 39 : index
    %101 = memref.load %arg1[%c39] : memref<72xf32, #tpu.memory_space<smem>>
    %102 = vector.broadcast %101 : f32 to vector<16x128xf32>
    %103 = arith.mulf %102, %24 : vector<16x128xf32>
    %104 = arith.addf %100, %103 : vector<16x128xf32>
    %c40 = arith.constant 40 : index
    %105 = memref.load %arg1[%c40] : memref<72xf32, #tpu.memory_space<smem>>
    %106 = vector.broadcast %105 : f32 to vector<16x128xf32>
    %107 = arith.mulf %106, %21 : vector<16x128xf32>
    %108 = arith.addf %104, %107 : vector<16x128xf32>
    %c41 = arith.constant 41 : index
    %109 = memref.load %arg1[%c41] : memref<72xf32, #tpu.memory_space<smem>>
    %110 = vector.broadcast %109 : f32 to vector<16x128xf32>
    %111 = arith.mulf %110, %27 : vector<16x128xf32>
    %112 = arith.addf %108, %111 : vector<16x128xf32>
    %c42 = arith.constant 42 : index
    %113 = memref.load %arg1[%c42] : memref<72xf32, #tpu.memory_space<smem>>
    %114 = vector.broadcast %113 : f32 to vector<16x128xf32>
    %115 = arith.mulf %114, %33 : vector<16x128xf32>
    %116 = arith.addf %112, %115 : vector<16x128xf32>
    %c43 = arith.constant 43 : index
    %117 = memref.load %arg1[%c43] : memref<72xf32, #tpu.memory_space<smem>>
    %118 = vector.broadcast %117 : f32 to vector<16x128xf32>
    %119 = arith.mulf %118, %39 : vector<16x128xf32>
    %120 = arith.addf %116, %119 : vector<16x128xf32>
    %c44 = arith.constant 44 : index
    %121 = memref.load %arg1[%c44] : memref<72xf32, #tpu.memory_space<smem>>
    %122 = vector.broadcast %121 : f32 to vector<16x128xf32>
    %123 = arith.mulf %122, %45 : vector<16x128xf32>
    %124 = arith.addf %120, %123 : vector<16x128xf32>
    %c1_36 = arith.constant 1 : index
    %c0_37 = arith.constant 0 : index
    %c0_38 = arith.constant 0 : index
    %125 = vector.load %arg6[%c1_36, %c0_37, %c0_38] : memref<2x16x128xf32, #tpu.memory_space<vmem>>, vector<1x16x128xf32>
    %126 = vector.shape_cast %125 : vector<1x16x128xf32> to vector<16x128xf32>
    %127 = vector.shape_cast %124 : vector<16x128xf32> to vector<1x16x128xf32>
    tpu.vector_store %arg6[%c1_36, %c0_37, %c0_38], %127 {strides = array<i32>} : memref<2x16x128xf32, #tpu.memory_space<vmem>>, vector<1x16x128xf32>,
    %c0_39 = arith.constant 0 : index
    %c1_40 = arith.constant 1 : index
    %c0_41 = arith.constant 0 : index
    %c0_42 = arith.constant 0 : index
    %128 = vector.load %arg3[%c0_39, %c1_40, %c0_41, %c0_42] : memref<1x4x16x128xf32, #tpu.memory_space<vmem>>, vector<1x1x16x128xf32>
    %129 = vector.shape_cast %128 : vector<1x1x16x128xf32> to vector<16x128xf32>
    %c1_i32_43 = arith.constant 1 : i32
    %130 = tpu.dynamic_rotate %129 by %c1_i32_43 dim 1 : vector<16x128xf32>, i32 -> vector<16x128xf32>
    %cst_44 = arith.constant 0.000000e+00 : f32
    %131 = vector.broadcast %cst_44 : f32 to vector<16x128xf32>
    %132 = arith.select %7, %131, %130 : vector<16x128xi1>, vector<16x128xf32>
    %c127_i32_45 = arith.constant 127 : i32
    %133 = tpu.dynamic_rotate %129 by %c127_i32_45 dim 1 : vector<16x128xf32>, i32 -> vector<16x128xf32>
    %cst_46 = arith.constant 0.000000e+00 : f32
    %134 = vector.broadcast %cst_46 : f32 to vector<16x128xf32>
    %135 = arith.select %9, %134, %133 : vector<16x128xi1>, vector<16x128xf32>
    %c1_i32_47 = arith.constant 1 : i32
    %136 = tpu.dynamic_rotate %132 by %c1_i32_47 dim 0 : vector<16x128xf32>, i32 -> vector<16x128xf32>
    %cst_48 = arith.constant 0.000000e+00 : f32
    %137 = vector.broadcast %cst_48 : f32 to vector<16x128xf32>
    %138 = arith.select %3, %137, %136 : vector<16x128xi1>, vector<16x128xf32>
    %c15_i32_49 = arith.constant 15 : i32
    %139 = tpu.dynamic_rotate %132 by %c15_i32_49 dim 0 : vector<16x128xf32>, i32 -> vector<16x128xf32>
    %cst_50 = arith.constant 0.000000e+00 : f32
    %140 = vector.broadcast %cst_50 : f32 to vector<16x128xf32>
    %141 = arith.select %5, %140, %139 : vector<16x128xi1>, vector<16x128xf32>
    %c1_i32_51 = arith.constant 1 : i32
    %142 = tpu.dynamic_rotate %129 by %c1_i32_51 dim 0 : vector<16x128xf32>, i32 -> vector<16x128xf32>
    %cst_52 = arith.constant 0.000000e+00 : f32
    %143 = vector.broadcast %cst_52 : f32 to vector<16x128xf32>
    %144 = arith.select %3, %143, %142 : vector<16x128xi1>, vector<16x128xf32>
    %c15_i32_53 = arith.constant 15 : i32
    %145 = tpu.dynamic_rotate %129 by %c15_i32_53 dim 0 : vector<16x128xf32>, i32 -> vector<16x128xf32>
    %cst_54 = arith.constant 0.000000e+00 : f32
    %146 = vector.broadcast %cst_54 : f32 to vector<16x128xf32>
    %147 = arith.select %5, %146, %145 : vector<16x128xi1>, vector<16x128xf32>
    %c1_i32_55 = arith.constant 1 : i32
    %148 = tpu.dynamic_rotate %135 by %c1_i32_55 dim 0 : vector<16x128xf32>, i32 -> vector<16x128xf32>
    %cst_56 = arith.constant 0.000000e+00 : f32
    %149 = vector.broadcast %cst_56 : f32 to vector<16x128xf32>
    %150 = arith.select %3, %149, %148 : vector<16x128xi1>, vector<16x128xf32>
    %c15_i32_57 = arith.constant 15 : i32
    %151 = tpu.dynamic_rotate %135 by %c15_i32_57 dim 0 : vector<16x128xf32>, i32 -> vector<16x128xf32>
    %cst_58 = arith.constant 0.000000e+00 : f32
    %152 = vector.broadcast %cst_58 : f32 to vector<16x128xf32>
    %153 = arith.select %5, %152, %151 : vector<16x128xi1>, vector<16x128xf32>
    %c0_59 = arith.constant 0 : index
    %c0_60 = arith.constant 0 : index
    %c0_61 = arith.constant 0 : index
    %154 = vector.load %arg6[%c0_59, %c0_60, %c0_61] : memref<2x16x128xf32, #tpu.memory_space<vmem>>, vector<1x16x128xf32>
    %155 = vector.shape_cast %154 : vector<1x16x128xf32> to vector<16x128xf32>
    %c9 = arith.constant 9 : index
    %156 = memref.load %arg1[%c9] : memref<72xf32, #tpu.memory_space<smem>>
    %157 = vector.broadcast %156 : f32 to vector<16x128xf32>
    %158 = arith.mulf %157, %138 : vector<16x128xf32>
    %159 = arith.addf %155, %158 : vector<16x128xf32>
    %c10 = arith.constant 10 : index
    %160 = memref.load %arg1[%c10] : memref<72xf32, #tpu.memory_space<smem>>
    %161 = vector.broadcast %160 : f32 to vector<16x128xf32>
    %162 = arith.mulf %161, %144 : vector<16x128xf32>
    %163 = arith.addf %159, %162 : vector<16x128xf32>
    %c11 = arith.constant 11 : index
    %164 = memref.load %arg1[%c11] : memref<72xf32, #tpu.memory_space<smem>>
    %165 = vector.broadcast %164 : f32 to vector<16x128xf32>
    %166 = arith.mulf %165, %150 : vector<16x128xf32>
    %167 = arith.addf %163, %166 : vector<16x128xf32>
    %c12 = arith.constant 12 : index
    %168 = memref.load %arg1[%c12] : memref<72xf32, #tpu.memory_space<smem>>
    %169 = vector.broadcast %168 : f32 to vector<16x128xf32>
    %170 = arith.mulf %169, %132 : vector<16x128xf32>
    %171 = arith.addf %167, %170 : vector<16x128xf32>
    %c13 = arith.constant 13 : index
    %172 = memref.load %arg1[%c13] : memref<72xf32, #tpu.memory_space<smem>>
    %173 = vector.broadcast %172 : f32 to vector<16x128xf32>
    %174 = arith.mulf %173, %129 : vector<16x128xf32>
    %175 = arith.addf %171, %174 : vector<16x128xf32>
    %c14 = arith.constant 14 : index
    %176 = memref.load %arg1[%c14] : memref<72xf32, #tpu.memory_space<smem>>
    %177 = vector.broadcast %176 : f32 to vector<16x128xf32>
    %178 = arith.mulf %177, %135 : vector<16x128xf32>
    %179 = arith.addf %175, %178 : vector<16x128xf32>
    %c15 = arith.constant 15 : index
    %180 = memref.load %arg1[%c15] : memref<72xf32, #tpu.memory_space<smem>>
    %181 = vector.broadcast %180 : f32 to vector<16x128xf32>
    %182 = arith.mulf %181, %141 : vector<16x128xf32>
    %183 = arith.addf %179, %182 : vector<16x128xf32>
    %c16 = arith.constant 16 : index
    %184 = memref.load %arg1[%c16] : memref<72xf32, #tpu.memory_space<smem>>
    %185 = vector.broadcast %184 : f32 to vector<16x128xf32>
    %186 = arith.mulf %185, %147 : vector<16x128xf32>
    %187 = arith.addf %183, %186 : vector<16x128xf32>
    %c17 = arith.constant 17 : index
    %188 = memref.load %arg1[%c17] : memref<72xf32, #tpu.memory_space<smem>>
    %189 = vector.broadcast %188 : f32 to vector<16x128xf32>
    %190 = arith.mulf %189, %153 : vector<16x128xf32>
    %191 = arith.addf %187, %190 : vector<16x128xf32>
    %c0_62 = arith.constant 0 : index
    %c0_63 = arith.constant 0 : index
    %c0_64 = arith.constant 0 : index
    %192 = vector.load %arg6[%c0_62, %c0_63, %c0_64] : memref<2x16x128xf32, #tpu.memory_space<vmem>>, vector<1x16x128xf32>
    %193 = vector.shape_cast %192 : vector<1x16x128xf32> to vector<16x128xf32>
    %194 = vector.shape_cast %191 : vector<16x128xf32> to vector<1x16x128xf32>
    tpu.vector_store %arg6[%c0_62, %c0_63, %c0_64], %194 {strides = array<i32>} : memref<2x16x128xf32, #tpu.memory_space<vmem>>, vector<1x16x128xf32>,
    %c1_65 = arith.constant 1 : index
    %c0_66 = arith.constant 0 : index
    %c0_67 = arith.constant 0 : index
    %195 = vector.load %arg6[%c1_65, %c0_66, %c0_67] : memref<2x16x128xf32, #tpu.memory_space<vmem>>, vector<1x16x128xf32>
    %196 = vector.shape_cast %195 : vector<1x16x128xf32> to vector<16x128xf32>
    %c45 = arith.constant 45 : index
    %197 = memref.load %arg1[%c45] : memref<72xf32, #tpu.memory_space<smem>>
    %198 = vector.broadcast %197 : f32 to vector<16x128xf32>
    %199 = arith.mulf %198, %138 : vector<16x128xf32>
    %200 = arith.addf %196, %199 : vector<16x128xf32>
    %c46 = arith.constant 46 : index
    %201 = memref.load %arg1[%c46] : memref<72xf32, #tpu.memory_space<smem>>
    %202 = vector.broadcast %201 : f32 to vector<16x128xf32>
    %203 = arith.mulf %202, %144 : vector<16x128xf32>
    %204 = arith.addf %200, %203 : vector<16x128xf32>
    %c47 = arith.constant 47 : index
    %205 = memref.load %arg1[%c47] : memref<72xf32, #tpu.memory_space<smem>>
    %206 = vector.broadcast %205 : f32 to vector<16x128xf32>
    %207 = arith.mulf %206, %150 : vector<16x128xf32>
    %208 = arith.addf %204, %207 : vector<16x128xf32>
    %c48 = arith.constant 48 : index
    %209 = memref.load %arg1[%c48] : memref<72xf32, #tpu.memory_space<smem>>
    %210 = vector.broadcast %209 : f32 to vector<16x128xf32>
    %211 = arith.mulf %210, %132 : vector<16x128xf32>
    %212 = arith.addf %208, %211 : vector<16x128xf32>
    %c49 = arith.constant 49 : index
    %213 = memref.load %arg1[%c49] : memref<72xf32, #tpu.memory_space<smem>>
    %214 = vector.broadcast %213 : f32 to vector<16x128xf32>
    %215 = arith.mulf %214, %129 : vector<16x128xf32>
    %216 = arith.addf %212, %215 : vector<16x128xf32>
    %c50 = arith.constant 50 : index
    %217 = memref.load %arg1[%c50] : memref<72xf32, #tpu.memory_space<smem>>
    %218 = vector.broadcast %217 : f32 to vector<16x128xf32>
    %219 = arith.mulf %218, %135 : vector<16x128xf32>
    %220 = arith.addf %216, %219 : vector<16x128xf32>
    %c51 = arith.constant 51 : index
    %221 = memref.load %arg1[%c51] : memref<72xf32, #tpu.memory_space<smem>>
    %222 = vector.broadcast %221 : f32 to vector<16x128xf32>
    %223 = arith.mulf %222, %141 : vector<16x128xf32>
    %224 = arith.addf %220, %223 : vector<16x128xf32>
    %c52 = arith.constant 52 : index
    %225 = memref.load %arg1[%c52] : memref<72xf32, #tpu.memory_space<smem>>
    %226 = vector.broadcast %225 : f32 to vector<16x128xf32>
    %227 = arith.mulf %226, %147 : vector<16x128xf32>
    %228 = arith.addf %224, %227 : vector<16x128xf32>
    %c53 = arith.constant 53 : index
    %229 = memref.load %arg1[%c53] : memref<72xf32, #tpu.memory_space<smem>>
    %230 = vector.broadcast %229 : f32 to vector<16x128xf32>
    %231 = arith.mulf %230, %153 : vector<16x128xf32>
    %232 = arith.addf %228, %231 : vector<16x128xf32>
    %c1_68 = arith.constant 1 : index
    %c0_69 = arith.constant 0 : index
    %c0_70 = arith.constant 0 : index
    %233 = vector.load %arg6[%c1_68, %c0_69, %c0_70] : memref<2x16x128xf32, #tpu.memory_space<vmem>>, vector<1x16x128xf32>
    %234 = vector.shape_cast %233 : vector<1x16x128xf32> to vector<16x128xf32>
    %235 = vector.shape_cast %232 : vector<16x128xf32> to vector<1x16x128xf32>
    tpu.vector_store %arg6[%c1_68, %c0_69, %c0_70], %235 {strides = array<i32>} : memref<2x16x128xf32, #tpu.memory_space<vmem>>, vector<1x16x128xf32>,
    %c0_71 = arith.constant 0 : index
    %c2_72 = arith.constant 2 : index
    %c0_73 = arith.constant 0 : index
    %c0_74 = arith.constant 0 : index
    %236 = vector.load %arg3[%c0_71, %c2_72, %c0_73, %c0_74] : memref<1x4x16x128xf32, #tpu.memory_space<vmem>>, vector<1x1x16x128xf32>
    %237 = vector.shape_cast %236 : vector<1x1x16x128xf32> to vector<16x128xf32>
    %c1_i32_75 = arith.constant 1 : i32
    %238 = tpu.dynamic_rotate %237 by %c1_i32_75 dim 1 : vector<16x128xf32>, i32 -> vector<16x128xf32>
    %cst_76 = arith.constant 0.000000e+00 : f32
    %239 = vector.broadcast %cst_76 : f32 to vector<16x128xf32>
    %240 = arith.select %7, %239, %238 : vector<16x128xi1>, vector<16x128xf32>
    %c127_i32_77 = arith.constant 127 : i32
    %241 = tpu.dynamic_rotate %237 by %c127_i32_77 dim 1 : vector<16x128xf32>, i32 -> vector<16x128xf32>
    %cst_78 = arith.constant 0.000000e+00 : f32
    %242 = vector.broadcast %cst_78 : f32 to vector<16x128xf32>
    %243 = arith.select %9, %242, %241 : vector<16x128xi1>, vector<16x128xf32>
    %c1_i32_79 = arith.constant 1 : i32
    %244 = tpu.dynamic_rotate %240 by %c1_i32_79 dim 0 : vector<16x128xf32>, i32 -> vector<16x128xf32>
    %cst_80 = arith.constant 0.000000e+00 : f32
    %245 = vector.broadcast %cst_80 : f32 to vector<16x128xf32>
    %246 = arith.select %3, %245, %244 : vector<16x128xi1>, vector<16x128xf32>
    %c15_i32_81 = arith.constant 15 : i32
    %247 = tpu.dynamic_rotate %240 by %c15_i32_81 dim 0 : vector<16x128xf32>, i32 -> vector<16x128xf32>
    %cst_82 = arith.constant 0.000000e+00 : f32
    %248 = vector.broadcast %cst_82 : f32 to vector<16x128xf32>
    %249 = arith.select %5, %248, %247 : vector<16x128xi1>, vector<16x128xf32>
    %c1_i32_83 = arith.constant 1 : i32
    %250 = tpu.dynamic_rotate %237 by %c1_i32_83 dim 0 : vector<16x128xf32>, i32 -> vector<16x128xf32>
    %cst_84 = arith.constant 0.000000e+00 : f32
    %251 = vector.broadcast %cst_84 : f32 to vector<16x128xf32>
    %252 = arith.select %3, %251, %250 : vector<16x128xi1>, vector<16x128xf32>
    %c15_i32_85 = arith.constant 15 : i32
    %253 = tpu.dynamic_rotate %237 by %c15_i32_85 dim 0 : vector<16x128xf32>, i32 -> vector<16x128xf32>
    %cst_86 = arith.constant 0.000000e+00 : f32
    %254 = vector.broadcast %cst_86 : f32 to vector<16x128xf32>
    %255 = arith.select %5, %254, %253 : vector<16x128xi1>, vector<16x128xf32>
    %c1_i32_87 = arith.constant 1 : i32
    %256 = tpu.dynamic_rotate %243 by %c1_i32_87 dim 0 : vector<16x128xf32>, i32 -> vector<16x128xf32>
    %cst_88 = arith.constant 0.000000e+00 : f32
    %257 = vector.broadcast %cst_88 : f32 to vector<16x128xf32>
    %258 = arith.select %3, %257, %256 : vector<16x128xi1>, vector<16x128xf32>
    %c15_i32_89 = arith.constant 15 : i32
    %259 = tpu.dynamic_rotate %243 by %c15_i32_89 dim 0 : vector<16x128xf32>, i32 -> vector<16x128xf32>
    %cst_90 = arith.constant 0.000000e+00 : f32
    %260 = vector.broadcast %cst_90 : f32 to vector<16x128xf32>
    %261 = arith.select %5, %260, %259 : vector<16x128xi1>, vector<16x128xf32>
    %c0_91 = arith.constant 0 : index
    %c0_92 = arith.constant 0 : index
    %c0_93 = arith.constant 0 : index
    %262 = vector.load %arg6[%c0_91, %c0_92, %c0_93] : memref<2x16x128xf32, #tpu.memory_space<vmem>>, vector<1x16x128xf32>
    %263 = vector.shape_cast %262 : vector<1x16x128xf32> to vector<16x128xf32>
    %c18 = arith.constant 18 : index
    %264 = memref.load %arg1[%c18] : memref<72xf32, #tpu.memory_space<smem>>
    %265 = vector.broadcast %264 : f32 to vector<16x128xf32>
    %266 = arith.mulf %265, %246 : vector<16x128xf32>
    %267 = arith.addf %263, %266 : vector<16x128xf32>
    %c19 = arith.constant 19 : index
    %268 = memref.load %arg1[%c19] : memref<72xf32, #tpu.memory_space<smem>>
    %269 = vector.broadcast %268 : f32 to vector<16x128xf32>
    %270 = arith.mulf %269, %252 : vector<16x128xf32>
    %271 = arith.addf %267, %270 : vector<16x128xf32>
    %c20 = arith.constant 20 : index
    %272 = memref.load %arg1[%c20] : memref<72xf32, #tpu.memory_space<smem>>
    %273 = vector.broadcast %272 : f32 to vector<16x128xf32>
    %274 = arith.mulf %273, %258 : vector<16x128xf32>
    %275 = arith.addf %271, %274 : vector<16x128xf32>
    %c21 = arith.constant 21 : index
    %276 = memref.load %arg1[%c21] : memref<72xf32, #tpu.memory_space<smem>>
    %277 = vector.broadcast %276 : f32 to vector<16x128xf32>
    %278 = arith.mulf %277, %240 : vector<16x128xf32>
    %279 = arith.addf %275, %278 : vector<16x128xf32>
    %c22 = arith.constant 22 : index
    %280 = memref.load %arg1[%c22] : memref<72xf32, #tpu.memory_space<smem>>
    %281 = vector.broadcast %280 : f32 to vector<16x128xf32>
    %282 = arith.mulf %281, %237 : vector<16x128xf32>
    %283 = arith.addf %279, %282 : vector<16x128xf32>
    %c23 = arith.constant 23 : index
    %284 = memref.load %arg1[%c23] : memref<72xf32, #tpu.memory_space<smem>>
    %285 = vector.broadcast %284 : f32 to vector<16x128xf32>
    %286 = arith.mulf %285, %243 : vector<16x128xf32>
    %287 = arith.addf %283, %286 : vector<16x128xf32>
    %c24 = arith.constant 24 : index
    %288 = memref.load %arg1[%c24] : memref<72xf32, #tpu.memory_space<smem>>
    %289 = vector.broadcast %288 : f32 to vector<16x128xf32>
    %290 = arith.mulf %289, %249 : vector<16x128xf32>
    %291 = arith.addf %287, %290 : vector<16x128xf32>
    %c25 = arith.constant 25 : index
    %292 = memref.load %arg1[%c25] : memref<72xf32, #tpu.memory_space<smem>>
    %293 = vector.broadcast %292 : f32 to vector<16x128xf32>
    %294 = arith.mulf %293, %255 : vector<16x128xf32>
    %295 = arith.addf %291, %294 : vector<16x128xf32>
    %c26 = arith.constant 26 : index
    %296 = memref.load %arg1[%c26] : memref<72xf32, #tpu.memory_space<smem>>
    %297 = vector.broadcast %296 : f32 to vector<16x128xf32>
    %298 = arith.mulf %297, %261 : vector<16x128xf32>
    %299 = arith.addf %295, %298 : vector<16x128xf32>
    %c0_94 = arith.constant 0 : index
    %c0_95 = arith.constant 0 : index
    %c0_96 = arith.constant 0 : index
    %300 = vector.load %arg6[%c0_94, %c0_95, %c0_96] : memref<2x16x128xf32, #tpu.memory_space<vmem>>, vector<1x16x128xf32>
    %301 = vector.shape_cast %300 : vector<1x16x128xf32> to vector<16x128xf32>
    %302 = vector.shape_cast %299 : vector<16x128xf32> to vector<1x16x128xf32>
    tpu.vector_store %arg6[%c0_94, %c0_95, %c0_96], %302 {strides = array<i32>} : memref<2x16x128xf32, #tpu.memory_space<vmem>>, vector<1x16x128xf32>,
    %c1_97 = arith.constant 1 : index
    %c0_98 = arith.constant 0 : index
    %c0_99 = arith.constant 0 : index
    %303 = vector.load %arg6[%c1_97, %c0_98, %c0_99] : memref<2x16x128xf32, #tpu.memory_space<vmem>>, vector<1x16x128xf32>
    %304 = vector.shape_cast %303 : vector<1x16x128xf32> to vector<16x128xf32>
    %c54 = arith.constant 54 : index
    %305 = memref.load %arg1[%c54] : memref<72xf32, #tpu.memory_space<smem>>
    %306 = vector.broadcast %305 : f32 to vector<16x128xf32>
    %307 = arith.mulf %306, %246 : vector<16x128xf32>
    %308 = arith.addf %304, %307 : vector<16x128xf32>
    %c55 = arith.constant 55 : index
    %309 = memref.load %arg1[%c55] : memref<72xf32, #tpu.memory_space<smem>>
    %310 = vector.broadcast %309 : f32 to vector<16x128xf32>
    %311 = arith.mulf %310, %252 : vector<16x128xf32>
    %312 = arith.addf %308, %311 : vector<16x128xf32>
    %c56 = arith.constant 56 : index
    %313 = memref.load %arg1[%c56] : memref<72xf32, #tpu.memory_space<smem>>
    %314 = vector.broadcast %313 : f32 to vector<16x128xf32>
    %315 = arith.mulf %314, %258 : vector<16x128xf32>
    %316 = arith.addf %312, %315 : vector<16x128xf32>
    %c57 = arith.constant 57 : index
    %317 = memref.load %arg1[%c57] : memref<72xf32, #tpu.memory_space<smem>>
    %318 = vector.broadcast %317 : f32 to vector<16x128xf32>
    %319 = arith.mulf %318, %240 : vector<16x128xf32>
    %320 = arith.addf %316, %319 : vector<16x128xf32>
    %c58 = arith.constant 58 : index
    %321 = memref.load %arg1[%c58] : memref<72xf32, #tpu.memory_space<smem>>
    %322 = vector.broadcast %321 : f32 to vector<16x128xf32>
    %323 = arith.mulf %322, %237 : vector<16x128xf32>
    %324 = arith.addf %320, %323 : vector<16x128xf32>
    %c59 = arith.constant 59 : index
    %325 = memref.load %arg1[%c59] : memref<72xf32, #tpu.memory_space<smem>>
    %326 = vector.broadcast %325 : f32 to vector<16x128xf32>
    %327 = arith.mulf %326, %243 : vector<16x128xf32>
    %328 = arith.addf %324, %327 : vector<16x128xf32>
    %c60 = arith.constant 60 : index
    %329 = memref.load %arg1[%c60] : memref<72xf32, #tpu.memory_space<smem>>
    %330 = vector.broadcast %329 : f32 to vector<16x128xf32>
    %331 = arith.mulf %330, %249 : vector<16x128xf32>
    %332 = arith.addf %328, %331 : vector<16x128xf32>
    %c61 = arith.constant 61 : index
    %333 = memref.load %arg1[%c61] : memref<72xf32, #tpu.memory_space<smem>>
    %334 = vector.broadcast %333 : f32 to vector<16x128xf32>
    %335 = arith.mulf %334, %255 : vector<16x128xf32>
    %336 = arith.addf %332, %335 : vector<16x128xf32>
    %c62 = arith.constant 62 : index
    %337 = memref.load %arg1[%c62] : memref<72xf32, #tpu.memory_space<smem>>
    %338 = vector.broadcast %337 : f32 to vector<16x128xf32>
    %339 = arith.mulf %338, %261 : vector<16x128xf32>
    %340 = arith.addf %336, %339 : vector<16x128xf32>
    %c1_100 = arith.constant 1 : index
    %c0_101 = arith.constant 0 : index
    %c0_102 = arith.constant 0 : index
    %341 = vector.load %arg6[%c1_100, %c0_101, %c0_102] : memref<2x16x128xf32, #tpu.memory_space<vmem>>, vector<1x16x128xf32>
    %342 = vector.shape_cast %341 : vector<1x16x128xf32> to vector<16x128xf32>
    %343 = vector.shape_cast %340 : vector<16x128xf32> to vector<1x16x128xf32>
    tpu.vector_store %arg6[%c1_100, %c0_101, %c0_102], %343 {strides = array<i32>} : memref<2x16x128xf32, #tpu.memory_space<vmem>>, vector<1x16x128xf32>,
    %c0_103 = arith.constant 0 : index
    %c3_104 = arith.constant 3 : index
    %c0_105 = arith.constant 0 : index
    %c0_106 = arith.constant 0 : index
    %344 = vector.load %arg3[%c0_103, %c3_104, %c0_105, %c0_106] : memref<1x4x16x128xf32, #tpu.memory_space<vmem>>, vector<1x1x16x128xf32>
    %345 = vector.shape_cast %344 : vector<1x1x16x128xf32> to vector<16x128xf32>
    %c1_i32_107 = arith.constant 1 : i32
    %346 = tpu.dynamic_rotate %345 by %c1_i32_107 dim 1 : vector<16x128xf32>, i32 -> vector<16x128xf32>
    %cst_108 = arith.constant 0.000000e+00 : f32
    %347 = vector.broadcast %cst_108 : f32 to vector<16x128xf32>
    %348 = arith.select %7, %347, %346 : vector<16x128xi1>, vector<16x128xf32>
    %c127_i32_109 = arith.constant 127 : i32
    %349 = tpu.dynamic_rotate %345 by %c127_i32_109 dim 1 : vector<16x128xf32>, i32 -> vector<16x128xf32>
    %cst_110 = arith.constant 0.000000e+00 : f32
    %350 = vector.broadcast %cst_110 : f32 to vector<16x128xf32>
    %351 = arith.select %9, %350, %349 : vector<16x128xi1>, vector<16x128xf32>
    %c1_i32_111 = arith.constant 1 : i32
    %352 = tpu.dynamic_rotate %348 by %c1_i32_111 dim 0 : vector<16x128xf32>, i32 -> vector<16x128xf32>
    %cst_112 = arith.constant 0.000000e+00 : f32
    %353 = vector.broadcast %cst_112 : f32 to vector<16x128xf32>
    %354 = arith.select %3, %353, %352 : vector<16x128xi1>, vector<16x128xf32>
    %c15_i32_113 = arith.constant 15 : i32
    %355 = tpu.dynamic_rotate %348 by %c15_i32_113 dim 0 : vector<16x128xf32>, i32 -> vector<16x128xf32>
    %cst_114 = arith.constant 0.000000e+00 : f32
    %356 = vector.broadcast %cst_114 : f32 to vector<16x128xf32>
    %357 = arith.select %5, %356, %355 : vector<16x128xi1>, vector<16x128xf32>
    %c1_i32_115 = arith.constant 1 : i32
    %358 = tpu.dynamic_rotate %345 by %c1_i32_115 dim 0 : vector<16x128xf32>, i32 -> vector<16x128xf32>
    %cst_116 = arith.constant 0.000000e+00 : f32
    %359 = vector.broadcast %cst_116 : f32 to vector<16x128xf32>
    %360 = arith.select %3, %359, %358 : vector<16x128xi1>, vector<16x128xf32>
    %c15_i32_117 = arith.constant 15 : i32
    %361 = tpu.dynamic_rotate %345 by %c15_i32_117 dim 0 : vector<16x128xf32>, i32 -> vector<16x128xf32>
    %cst_118 = arith.constant 0.000000e+00 : f32
    %362 = vector.broadcast %cst_118 : f32 to vector<16x128xf32>
    %363 = arith.select %5, %362, %361 : vector<16x128xi1>, vector<16x128xf32>
    %c1_i32_119 = arith.constant 1 : i32
    %364 = tpu.dynamic_rotate %351 by %c1_i32_119 dim 0 : vector<16x128xf32>, i32 -> vector<16x128xf32>
    %cst_120 = arith.constant 0.000000e+00 : f32
    %365 = vector.broadcast %cst_120 : f32 to vector<16x128xf32>
    %366 = arith.select %3, %365, %364 : vector<16x128xi1>, vector<16x128xf32>
    %c15_i32_121 = arith.constant 15 : i32
    %367 = tpu.dynamic_rotate %351 by %c15_i32_121 dim 0 : vector<16x128xf32>, i32 -> vector<16x128xf32>
    %cst_122 = arith.constant 0.000000e+00 : f32
    %368 = vector.broadcast %cst_122 : f32 to vector<16x128xf32>
    %369 = arith.select %5, %368, %367 : vector<16x128xi1>, vector<16x128xf32>
    %c0_123 = arith.constant 0 : index
    %c0_124 = arith.constant 0 : index
    %c0_125 = arith.constant 0 : index
    %370 = vector.load %arg6[%c0_123, %c0_124, %c0_125] : memref<2x16x128xf32, #tpu.memory_space<vmem>>, vector<1x16x128xf32>
    %371 = vector.shape_cast %370 : vector<1x16x128xf32> to vector<16x128xf32>
    %c27 = arith.constant 27 : index
    %372 = memref.load %arg1[%c27] : memref<72xf32, #tpu.memory_space<smem>>
    %373 = vector.broadcast %372 : f32 to vector<16x128xf32>
    %374 = arith.mulf %373, %354 : vector<16x128xf32>
    %375 = arith.addf %371, %374 : vector<16x128xf32>
    %c28 = arith.constant 28 : index
    %376 = memref.load %arg1[%c28] : memref<72xf32, #tpu.memory_space<smem>>
    %377 = vector.broadcast %376 : f32 to vector<16x128xf32>
    %378 = arith.mulf %377, %360 : vector<16x128xf32>
    %379 = arith.addf %375, %378 : vector<16x128xf32>
    %c29 = arith.constant 29 : index
    %380 = memref.load %arg1[%c29] : memref<72xf32, #tpu.memory_space<smem>>
    %381 = vector.broadcast %380 : f32 to vector<16x128xf32>
    %382 = arith.mulf %381, %366 : vector<16x128xf32>
    %383 = arith.addf %379, %382 : vector<16x128xf32>
    %c30 = arith.constant 30 : index
    %384 = memref.load %arg1[%c30] : memref<72xf32, #tpu.memory_space<smem>>
    %385 = vector.broadcast %384 : f32 to vector<16x128xf32>
    %386 = arith.mulf %385, %348 : vector<16x128xf32>
    %387 = arith.addf %383, %386 : vector<16x128xf32>
    %c31 = arith.constant 31 : index
    %388 = memref.load %arg1[%c31] : memref<72xf32, #tpu.memory_space<smem>>
    %389 = vector.broadcast %388 : f32 to vector<16x128xf32>
    %390 = arith.mulf %389, %345 : vector<16x128xf32>
    %391 = arith.addf %387, %390 : vector<16x128xf32>
    %c32 = arith.constant 32 : index
    %392 = memref.load %arg1[%c32] : memref<72xf32, #tpu.memory_space<smem>>
    %393 = vector.broadcast %392 : f32 to vector<16x128xf32>
    %394 = arith.mulf %393, %351 : vector<16x128xf32>
    %395 = arith.addf %391, %394 : vector<16x128xf32>
    %c33 = arith.constant 33 : index
    %396 = memref.load %arg1[%c33] : memref<72xf32, #tpu.memory_space<smem>>
    %397 = vector.broadcast %396 : f32 to vector<16x128xf32>
    %398 = arith.mulf %397, %357 : vector<16x128xf32>
    %399 = arith.addf %395, %398 : vector<16x128xf32>
    %c34 = arith.constant 34 : index
    %400 = memref.load %arg1[%c34] : memref<72xf32, #tpu.memory_space<smem>>
    %401 = vector.broadcast %400 : f32 to vector<16x128xf32>
    %402 = arith.mulf %401, %363 : vector<16x128xf32>
    %403 = arith.addf %399, %402 : vector<16x128xf32>
    %c35 = arith.constant 35 : index
    %404 = memref.load %arg1[%c35] : memref<72xf32, #tpu.memory_space<smem>>
    %405 = vector.broadcast %404 : f32 to vector<16x128xf32>
    %406 = arith.mulf %405, %369 : vector<16x128xf32>
    %407 = arith.addf %403, %406 : vector<16x128xf32>
    %c0_126 = arith.constant 0 : index
    %c0_127 = arith.constant 0 : index
    %c0_128 = arith.constant 0 : index
    %408 = vector.load %arg6[%c0_126, %c0_127, %c0_128] : memref<2x16x128xf32, #tpu.memory_space<vmem>>, vector<1x16x128xf32>
    %409 = vector.shape_cast %408 : vector<1x16x128xf32> to vector<16x128xf32>
    %410 = vector.shape_cast %407 : vector<16x128xf32> to vector<1x16x128xf32>
    tpu.vector_store %arg6[%c0_126, %c0_127, %c0_128], %410 {strides = array<i32>} : memref<2x16x128xf32, #tpu.memory_space<vmem>>, vector<1x16x128xf32>,
    %c1_129 = arith.constant 1 : index
    %c0_130 = arith.constant 0 : index
    %c0_131 = arith.constant 0 : index
    %411 = vector.load %arg6[%c1_129, %c0_130, %c0_131] : memref<2x16x128xf32, #tpu.memory_space<vmem>>, vector<1x16x128xf32>
    %412 = vector.shape_cast %411 : vector<1x16x128xf32> to vector<16x128xf32>
    %c63 = arith.constant 63 : index
    %413 = memref.load %arg1[%c63] : memref<72xf32, #tpu.memory_space<smem>>
    %414 = vector.broadcast %413 : f32 to vector<16x128xf32>
    %415 = arith.mulf %414, %354 : vector<16x128xf32>
    %416 = arith.addf %412, %415 : vector<16x128xf32>
    %c64 = arith.constant 64 : index
    %417 = memref.load %arg1[%c64] : memref<72xf32, #tpu.memory_space<smem>>
    %418 = vector.broadcast %417 : f32 to vector<16x128xf32>
    %419 = arith.mulf %418, %360 : vector<16x128xf32>
    %420 = arith.addf %416, %419 : vector<16x128xf32>
    %c65 = arith.constant 65 : index
    %421 = memref.load %arg1[%c65] : memref<72xf32, #tpu.memory_space<smem>>
    %422 = vector.broadcast %421 : f32 to vector<16x128xf32>
    %423 = arith.mulf %422, %366 : vector<16x128xf32>
    %424 = arith.addf %420, %423 : vector<16x128xf32>
    %c66 = arith.constant 66 : index
    %425 = memref.load %arg1[%c66] : memref<72xf32, #tpu.memory_space<smem>>
    %426 = vector.broadcast %425 : f32 to vector<16x128xf32>
    %427 = arith.mulf %426, %348 : vector<16x128xf32>
    %428 = arith.addf %424, %427 : vector<16x128xf32>
    %c67 = arith.constant 67 : index
    %429 = memref.load %arg1[%c67] : memref<72xf32, #tpu.memory_space<smem>>
    %430 = vector.broadcast %429 : f32 to vector<16x128xf32>
    %431 = arith.mulf %430, %345 : vector<16x128xf32>
    %432 = arith.addf %428, %431 : vector<16x128xf32>
    %c68 = arith.constant 68 : index
    %433 = memref.load %arg1[%c68] : memref<72xf32, #tpu.memory_space<smem>>
    %434 = vector.broadcast %433 : f32 to vector<16x128xf32>
    %435 = arith.mulf %434, %351 : vector<16x128xf32>
    %436 = arith.addf %432, %435 : vector<16x128xf32>
    %c69 = arith.constant 69 : index
    %437 = memref.load %arg1[%c69] : memref<72xf32, #tpu.memory_space<smem>>
    %438 = vector.broadcast %437 : f32 to vector<16x128xf32>
    %439 = arith.mulf %438, %357 : vector<16x128xf32>
    %440 = arith.addf %436, %439 : vector<16x128xf32>
    %c70 = arith.constant 70 : index
    %441 = memref.load %arg1[%c70] : memref<72xf32, #tpu.memory_space<smem>>
    %442 = vector.broadcast %441 : f32 to vector<16x128xf32>
    %443 = arith.mulf %442, %363 : vector<16x128xf32>
    %444 = arith.addf %440, %443 : vector<16x128xf32>
    %c71 = arith.constant 71 : index
    %445 = memref.load %arg1[%c71] : memref<72xf32, #tpu.memory_space<smem>>
    %446 = vector.broadcast %445 : f32 to vector<16x128xf32>
    %447 = arith.mulf %446, %369 : vector<16x128xf32>
    %448 = arith.addf %444, %447 : vector<16x128xf32>
    %c1_132 = arith.constant 1 : index
    %c0_133 = arith.constant 0 : index
    %c0_134 = arith.constant 0 : index
    %449 = vector.load %arg6[%c1_132, %c0_133, %c0_134] : memref<2x16x128xf32, #tpu.memory_space<vmem>>, vector<1x16x128xf32>
    %450 = vector.shape_cast %449 : vector<1x16x128xf32> to vector<16x128xf32>
    %451 = vector.shape_cast %448 : vector<16x128xf32> to vector<1x16x128xf32>
    tpu.vector_store %arg6[%c1_132, %c0_133, %c0_134], %451 {strides = array<i32>} : memref<2x16x128xf32, #tpu.memory_space<vmem>>, vector<1x16x128xf32>,
    %c0_135 = arith.constant 0 : index
    %c0_136 = arith.constant 0 : index
    %c0_137 = arith.constant 0 : index
    %452 = vector.load %arg6[%c0_135, %c0_136, %c0_137] : memref<2x16x128xf32, #tpu.memory_space<vmem>>, vector<1x16x128xf32>
    %453 = vector.shape_cast %452 : vector<1x16x128xf32> to vector<16x128xf32>
    %c1_138 = arith.constant 1 : index
    %c0_139 = arith.constant 0 : index
    %c0_140 = arith.constant 0 : index
    %454 = vector.load %arg6[%c1_138, %c0_139, %c0_140] : memref<2x16x128xf32, #tpu.memory_space<vmem>>, vector<1x16x128xf32>
    %455 = vector.shape_cast %454 : vector<1x16x128xf32> to vector<16x128xf32>
    %456 = arith.maximumf %453, %455 : vector<16x128xf32>
    %c0_141 = arith.constant 0 : index
    %c0_142 = arith.constant 0 : index
    %c0_143 = arith.constant 0 : index
    %457 = vector.load %arg6[%c0_141, %c0_142, %c0_143] : memref<2x16x128xf32, #tpu.memory_space<vmem>>, vector<1x16x128xf32>
    %458 = vector.shape_cast %457 : vector<1x16x128xf32> to vector<16x128xf32>
    %459 = arith.subf %458, %456 : vector<16x128xf32>
    %460 = math.exp %459 : vector<16x128xf32>
    %c1_144 = arith.constant 1 : index
    %c0_145 = arith.constant 0 : index
    %c0_146 = arith.constant 0 : index
    %461 = vector.load %arg6[%c1_144, %c0_145, %c0_146] : memref<2x16x128xf32, #tpu.memory_space<vmem>>, vector<1x16x128xf32>
    %462 = vector.shape_cast %461 : vector<1x16x128xf32> to vector<16x128xf32>
    %463 = arith.subf %462, %456 : vector<16x128xf32>
    %464 = math.exp %463 : vector<16x128xf32>
    %465 = arith.addf %460, %464 : vector<16x128xf32>
    %466 = math.log %465 : vector<16x128xf32>
    %467 = arith.addf %456, %466 : vector<16x128xf32>
    %c0_147 = arith.constant 0 : index
    %c0_148 = arith.constant 0 : index
    %c0_149 = arith.constant 0 : index
    %468 = vector.load %arg4[%c0_147, %c0_148, %c0_149] : memref<1x16x128xi32, #tpu.memory_space<vmem>>, vector<1x16x128xi32>
    %469 = vector.shape_cast %468 : vector<1x16x128xi32> to vector<16x128xi32>
    %cst_150 = arith.constant 0.000000e+00 : f32
    %470 = vector.broadcast %cst_150 : f32 to vector<16x128xf32>
    %c0_i32_151 = arith.constant 0 : i32
    %471 = vector.broadcast %c0_i32_151 : i32 to vector<16x128xi32>
    %472 = arith.cmpi eq, %469, %471 : vector<16x128xi32>
    %c0_152 = arith.constant 0 : index
    %c0_153 = arith.constant 0 : index
    %c0_154 = arith.constant 0 : index
    %473 = vector.load %arg6[%c0_152, %c0_153, %c0_154] : memref<2x16x128xf32, #tpu.memory_space<vmem>>, vector<1x16x128xf32>
    %474 = vector.shape_cast %473 : vector<1x16x128xf32> to vector<16x128xf32>
    %cst_155 = arith.constant 0.000000e+00 : f32
    %475 = vector.broadcast %cst_155 : f32 to vector<16x128xf32>
    %476 = arith.select %472, %474, %475 : vector<16x128xi1>, vector<16x128xf32>
    %477 = arith.addf %470, %476 : vector<16x128xf32>
    %c1_i32_156 = arith.constant 1 : i32
    %478 = vector.broadcast %c1_i32_156 : i32 to vector<16x128xi32>
    %479 = arith.cmpi eq, %469, %478 : vector<16x128xi32>
    %c1_157 = arith.constant 1 : index
    %c0_158 = arith.constant 0 : index
    %c0_159 = arith.constant 0 : index
    %480 = vector.load %arg6[%c1_157, %c0_158, %c0_159] : memref<2x16x128xf32, #tpu.memory_space<vmem>>, vector<1x16x128xf32>
    %481 = vector.shape_cast %480 : vector<1x16x128xf32> to vector<16x128xf32>
    %cst_160 = arith.constant 0.000000e+00 : f32
    %482 = vector.broadcast %cst_160 : f32 to vector<16x128xf32>
    %483 = arith.select %479, %481, %482 : vector<16x128xi1>, vector<16x128xf32>
    %484 = arith.addf %477, %483 : vector<16x128xf32>
    %c0_i32_161 = arith.constant 0 : i32
    %485 = vector.broadcast %c0_i32_161 : i32 to vector<16x128xi32>
    %486 = arith.cmpi sge, %469, %485 : vector<16x128xi32>
    %487 = arith.extui %486 : vector<16x128xi1> to vector<16x128xi32>
    %488 = arith.sitofp %487 : vector<16x128xi32> to vector<16x128xf32>
    %489 = arith.subf %467, %484 : vector<16x128xf32>
    %490 = arith.mulf %489, %488 : vector<16x128xf32>
    %491 = vector.shape_cast %490 : vector<16x128xf32> to vector<1x16x128xf32>
    %cst_162 = arith.constant dense<0.000000e+00> : vector<1xf32>
    %492 = vector.multi_reduction <add>, %491, %cst_162 [1, 2] : vector<1x16x128xf32> to vector<1xf32>
    %493 = vector.shape_cast %492 : vector<1xf32> to vector<1x1x1xf32>
    %494 = vector.extract %493[0, 0, 0] : f32 from vector<1x1x1xf32>
    %495 = vector.shape_cast %488 : vector<16x128xf32> to vector<1x16x128xf32>
    %cst_163 = arith.constant dense<0.000000e+00> : vector<1xf32>
    %496 = vector.multi_reduction <add>, %495, %cst_163 [1, 2] : vector<1x16x128xf32> to vector<1xf32>
    %497 = vector.shape_cast %496 : vector<1xf32> to vector<1x1x1xf32>
    %498 = vector.extract %497[0, 0, 0] : f32 from vector<1x1x1xf32>
    %499 = tpu.iota {dimensions = array<i32: 1>} : vector<1x128xi32>
    %c0_i32_164 = arith.constant 0 : i32
    %500 = vector.broadcast %c0_i32_164 : i32 to vector<1x128xi32>
    %501 = arith.cmpi eq, %499, %500 : vector<1x128xi32>
    %c1_i32_165 = arith.constant 1 : i32
    %502 = vector.broadcast %c1_i32_165 : i32 to vector<1x128xi32>
    %503 = arith.cmpi eq, %499, %502 : vector<1x128xi32>
    %cst_166 = arith.constant 0.000000e+00 : f32
    %504 = vector.broadcast %498 : f32 to vector<1x128xf32>
    %505 = vector.broadcast %cst_166 : f32 to vector<1x128xf32>
    %506 = arith.select %503, %504, %505 : vector<1x128xi1>, vector<1x128xf32>
    %507 = vector.broadcast %494 : f32 to vector<1x128xf32>
    %508 = arith.select %501, %507, %506 : vector<1x128xi1>, vector<1x128xf32>
    %c0_167 = arith.constant 0 : index
    %c0_168 = arith.constant 0 : index
    %c0_169 = arith.constant 0 : index
    %509 = vector.load %arg5[%c0_167, %c0_168, %c0_169] : memref<1x1x128xf32, #tpu.memory_space<vmem>>, vector<1x1x128xf32>
    %510 = vector.shape_cast %509 : vector<1x1x128xf32> to vector<1x128xf32>
    %511 = vector.shape_cast %508 : vector<1x128xf32> to vector<1x1x128xf32>
    tpu.vector_store %arg5[%c0_167, %c0_168, %c0_169], %511 {strides = array<i32>} : memref<1x1x128xf32, #tpu.memory_space<vmem>>, vector<1x1x128xf32>,
    return
  }
  func.func @transform_0(%arg0: i32) -> i32 {
    %c0_i32 = arith.constant 0 : i32
    %c0_i32_0 = arith.constant 0 : i32
    return %c0_i32 : i32
  }
  func.func @transform_1(%arg0: i32) -> i32 {
    %c0_i32 = arith.constant 0 : i32
    %c0_i32_0 = arith.constant 0 : i32
    return %c0_i32 : i32
  }
  func.func @transform_2(%arg0: i32) -> (i32, i32, i32, i32) {
    %c0_i32 = arith.constant 0 : i32
    %c0_i32_0 = arith.constant 0 : i32
    %c0_i32_1 = arith.constant 0 : i32
    %c0_i32_2 = arith.constant 0 : i32
    return %arg0, %c0_i32, %c0_i32_0, %c0_i32_1 : i32, i32, i32, i32
  }
  func.func @transform_3(%arg0: i32) -> (i32, i32, i32) {
    %c0_i32 = arith.constant 0 : i32
    %c0_i32_0 = arith.constant 0 : i32
    %c0_i32_1 = arith.constant 0 : i32
    return %arg0, %c0_i32, %c0_i32_0 : i32, i32, i32
  }
  func.func @transform_4(%arg0: i32) -> (i32, i32, i32) {
    %c0_i32 = arith.constant 0 : i32
    %c0_i32_0 = arith.constant 0 : i32
    %c0_i32_1 = arith.constant 0 : i32
    return %arg0, %c0_i32, %c0_i32_0 : i32, i32, i32
  }
}

</mosaic_0001>

<bundles_post_ra>
// kernel: tpu_custom_call.1
= control target key start
LH: loop header
LB: loop body
LE: loop exit
PB: predicated region body
PF: predicated region fallthrough
CT: control target
= control target key end

     0   :  { %s2795_s0 = inlined_call_operand.hbm [shape: f32[72], index: 0, kind: input, shape index: {}]   ;;  %s2796_s1 = inlined_call_operand.vmem [shape: f32[2], index: 1, kind: input, shape index: {}]   ;;  %s2797_s2 = inlined_call_operand.hbm [shape: f32[2,4,16,128], index: 2, kind: input, shape index: {}]   ;;  %s2798_s3 = inlined_call_operand.hbm [shape: s32[2,16,128], index: 3, kind: input, shape index: {}]   ;;  %s2799_s4 = inlined_call_operand.hbm [shape: f32[2,1,128], index: 4, kind: output, shape index: {}]  }
   0x1   :  { %2883 = sst [smem:[#allocation87_spill]] %s2795_s0 }
   0x2   :  { %2884 = sst [smem:[#allocation88_spill]] %s2796_s1 }
   0x3   :  { %2885 = sst [smem:[#allocation89_spill]] %s2797_s2 }
   0x4   :  { %2886 = sst [smem:[#allocation90_spill]] %s2798_s3 }
   0x5   :  { %2887 = sst [smem:[#allocation91_spill]] %s2799_s4 }
   0x6   :  { %9 = vsyncpa [#allocation6], 0 }
   0x7   :  { %10 = vsyncpa [#allocation7], 0 }
   0x8   :  { %11 = vsyncpa [#allocation4], 0 }
   0x9   :  { %13 = vsyncpa [#allocation4 + $0x1], 0 }
   0xa   :  { %14 = vsyncpa [#allocation11], 0 }
   0xb   :  { %16 = vsyncpa [#allocation11 + $0x1], 0 }
   0xc   :  { %17 = vsyncpa [#allocation5], 0 }
   0xd   :  { %19 = vsyncpa [#allocation5 + $0x1], 0  ;;  %s1564_s15 = smov 0   ;;  %s1566_s16 = smov 0  }
   0xe   :  { %s1568_s17 = smov 0   ;;  %s1570_s18 = smov 0  }
   0xf LB: > { %2888 = sst [smem:[#allocation18_spill]] %s1515_s15  ;;  %s1585_s19 = sadd.s32 4294967295, %s1527_s18   ;;  %s1527_s18 = sphi %s1570_s18, %s3167_s18   ;;  %s1523_s17 = sphi %s1568_s17, %s3170_s17   ;;  %s1519_s16 = sphi %s1566_s16, %s3169_s16   ;;  %s1515_s15 = sphi %s1564_s15, %s3168_s15  }
  0x10   : > { %2889 = sst [smem:[#allocation19_spill]] %s1519_s16  ;;  %s1171_s20 = sadd.s32 4294967294, %s1527_s18  }
  0x11   : > { %2890 = sst [smem:[#allocation20_spill]] %s1523_s17  ;;  %s1589_s21 = sadd.s32 1, %s1527_s18  }
  0x12   : > { %2891 = sst [smem:[#allocation21_spill]] %s1527_s18  ;;  %s74_s22 = sadd.s32 1, %s1523_s17 }
  0x13   : > { %2892 = sst [smem:[#allocation22_spill]] %s1585_s19  ;;  %s71_s23 = ssub.s32 %s1527_s18, %s1589_s21 }
  0x14   : > { %2893 = sst [smem:[#allocation23_spill]] %s1589_s21  ;;  %p81_p0 = scmp.ne.s32.totalorder %s1523_s17, %s1519_s16 }
  0x15   : > { %p72_p1 = scmp.eq.s32.totalorder %s71_s23, 0  ;;  %p82_p2 = scmp.eq.s32.totalorder %s1527_s18, 0 }
  0x16   : > { %p87_p3 = scmp.ne.s32.totalorder %s1519_s16, %s1515_s15  ;;  %p2800_p4 = scmp.eq.s32.totalorder %s1585_s19, 0 }
  0x17   : > { %s1601_s24 = scalar_select %p72_p1, %s1523_s17, %s74_s22  }
  0x18   : > { %p1603_p5 = por %p82_p2, %p81_p0  ;;  %p1609_p6 = por %p2800_p4, %p87_p3 }
  0x19   : > { %2894 = sst [smem:[#allocation24_spill]] %s1601_s24  ;;  %p137_p7 = scmp.eq.s32.totalorder %s1585_s19, 1 }
  0x1a   : > { %s2896_s26 = scalar_select %p1609_p6, 1, 0 }
  0x1b   : > { %p143_p8 = scmp.eq.s32.totalorder %s1171_s20, 1  ;;  %p1172_p9 = scmp.ge.s32.totalorder %s1527_s18, 1 }
  0x1c   : > { %p150_p10 = scmp.lt.s32.totalorder %s1527_s18, 3  ;;  %p1616_p11 = por %p137_p7, %p81_p0 }
  0x1d   : > { %p1620_p12 = por %p143_p8, %p87_p3  ;;  %p1310_p4 = scmp.lt.s32.totalorder %s1527_s18, 2 }
  0x1e   : > { %s2897_s27 = scalar_select %p1616_p11, 1, 0 }
  0x1f   : > { %s2899_s28 = scalar_select %p1620_p12, 1, 0 }
  0x20   : > { %2898 = sst [smem:[#allocation25_spill]] %s2897_s27  ;;  %p1624_p13 = pnand %p1172_p9, %p150_p10 }
  0x21   : > { %2900 = sst [smem:[#allocation26_spill]] %s2899_s28  ;;  %p2903_p0 = scmp.eq.s32.totalorder %s1585_s19, 0 }
  0x22   : > { %p1290_p2 = pneg %p1624_p13  ;;  %s2902_s1 = sld [smem:[#allocation88_spill]] }
  0x23   : > { %p1643_p3 = pnand %p1310_p4, %p1603_p5  ;;  %s1648_s9 = sand.u32 1, %s1523_s17  }
  0x24   : > { %p1637_p7 = pnand %p1290_p2, %p2903_p0  ;;  %s1529_s10 = smov [#allocation3]  }
  0x25   : > { %s2906_s0 = sld [smem:[#allocation87_spill]] }
  0x26   : > { %p1382_p9 = pneg %p1637_p7 }
  0x28   : > { %s172_s6 = sshll.u32 %s2902_s1, 4  ;;  %s173_s6 = int_to_ptr.vmem [resolvable:$true] %s172_s6 }
  0x29   : > { %s1380_s13 = scalar_lea.vmem %s173_s6, 16  ;;  %p1388_p0 = scmp.lt.s32.totalorder %s173_s6, %s173_s6 }
  0x2a   : > { %p1381_p8 = scmp.ne.s32.totalorder %s173_s6, %s1380_s13  ;;  %p1389_p4 = scmp.lt.s32.totalorder %s1380_s13, %s1380_s13 }
  0x2b   : > { %1293 = dma.hbm_to_smem (!%p1637_p7), %s2906_s0, 16, %s1529_s10, [#allocation6]  }
  0x2c   : > { %p1383_p10 = pnand %p1382_p9, %p1381_p8  ;;  %p1390_p5 = por %p1389_p4, %p1388_p0 }
  0x2e   : > { %p1384_p2 = pneg %p1383_p10 }
  0x30   : > { %p1391_p1 = pnand %p1390_p5, %p1384_p2 }
  0x32   : > { %1394 = shalt.err (!%p1391_p1)
}
  0x33   : > { %s1530_s14 = smov [#allocation8]   ;;  %s1176_s20 = sshll.u32 %s1648_s9, 6 }
  0x34   : > { %1296 = dma.vmem_to_smem (!%p1637_p7), %s173_s6, 16, %s1530_s14, [#allocation7]  }
  0x35   : > { %s1270_s22 = sshll.u32 %s1527_s18, 10  ;;  %s2907_s2 = sld [smem:[#allocation89_spill]] }
  0x36   : > { %s187_s5 = scalar_lea.vmem [#allocation9], %s1176_s20  ;;  %s184_s7 = scalar_lea.sflag [#allocation4], %s1648_s9 }
  0x37   : > { %s194_s10 = sshll.u32 %s187_s5, 4  ;;  %p1397_p8 = pneg %p1643_p3  ;;  %s1666_s10 = int_to_ptr.vmem [resolvable:$true] %s194_s10 }
  0x3b   : > { %s1664_s30 = scalar_lea.hbm %s2907_s2, %s1270_s22  ;;  %s1400_s13 = scalar_lea.hbm %s2907_s2, 2048 }
  0x3c   : > { %s1395_s11 = scalar_lea.hbm %s1664_s30, 1024  ;;  %p1401_p10 = scmp.lt.s32.totalorder %s1664_s30, %s2907_s2 }
  0x3d   : > { %p1396_p1 = scmp.ne.s32.totalorder %s1664_s30, %s1395_s11  ;;  %p1402_p2 = scmp.lt.s32.totalorder %s1400_s13, %s1395_s11 }
  0x3f   : > { %p1398_p7 = pnand %p1397_p8, %p1396_p1  ;;  %p1403_p0 = por %p1402_p2, %p1401_p10 }
  0x41   : > { %p1399_p9 = pneg %p1398_p7 }
  0x43   : > { %p1404_p4 = pnand %p1403_p0, %p1399_p9 }
  0x45   : > { %1407 = shalt.err (!%p1404_p4)
}
  0x46   : > { %s1408_s20 = scalar_lea.vmem %s1666_s10, 1024  ;;  %s1531_s23 = smov [#allocation9]  }
  0x47   : > { %p1409_p5 = scmp.ne.s32.totalorder %s1666_s10, %s1408_s20  ;;  %s1413_s25 = sshll.u32 %s1531_s23, 4  ;;  %s1414_s25 = int_to_ptr.vmem [resolvable:$false] %s1413_s25 }
  0x48   : > { %s1415_s5 = scalar_lea.vmem %s1414_s25, 2048  ;;  %p1416_p12 = scmp.lt.s32.totalorder %s1666_s10, %s1414_s25 }
  0x49   : > { %p1411_p1 = pnand %p1409_p5, %p1397_p8  ;;  %p1417_p11 = scmp.lt.s32.totalorder %s1415_s5, %s1408_s20 }
  0x4b   : > { %p1412_p7 = pneg %p1411_p1  ;;  %p1418_p6 = por %p1417_p11, %p1416_p12 }
  0x4d   : > { %p1419_p10 = pnand %p1418_p6, %p1412_p7 }
  0x4f   : > { %1422 = shalt.err (!%p1419_p10)
}
  0x50   : > { %s1532_s11 = smov 128   ;;  %s1533_s6 = smov 8  }
  0x51   : > { %1300 = dma.hbm_to_vmem [thread:$0]  (!%p1643_p3), %s1664_s30, 1024, %s1666_s10, %s184_s7, %s1532_s11, %s1532_s11, %s1533_s6  }
  0x52   : > { %s1179_s12 = sshll.u32 %s1648_s9, 4  ;;  %s1271_s13 = sshll.u32 %s1527_s18, 8 }
  0x53   : > { %s2908_s3 = sld [smem:[#allocation90_spill]]  ;;  %s208_s23 = scalar_lea.vmem [#allocation10], %s1179_s12 }
  0x54   : > { %s215_s25 = sshll.u32 %s208_s23, 4  ;;  %s205_s5 = scalar_lea.sflag [#allocation11], %s1648_s9  ;;  %s1705_s25 = int_to_ptr.vmem [resolvable:$true] %s215_s25 }
  0x59   : > { %s1703_s20 = scalar_lea.hbm %s2908_s3, %s1271_s13  ;;  %s1428_s7 = scalar_lea.hbm %s2908_s3, 512 }
  0x5a   : > { %s1423_s0 = scalar_lea.hbm %s1703_s20, 256  ;;  %p1429_p9 = scmp.lt.s32.totalorder %s1703_s20, %s2908_s3 }
  0x5b   : > { %p1424_p6 = scmp.ne.s32.totalorder %s1703_s20, %s1423_s0  ;;  %p1430_p2 = scmp.lt.s32.totalorder %s1428_s7, %s1423_s0 }
  0x5d   : > { %p1426_p11 = pnand %p1424_p6, %p1397_p8  ;;  %p1431_p0 = por %p1430_p2, %p1429_p9 }
  0x5f   : > { %p1427_p12 = pneg %p1426_p11 }
  0x61   : > { %p1432_p4 = pnand %p1431_p0, %p1427_p12 }
  0x63   : > { %1435 = shalt.err (!%p1432_p4)
}
  0x64   : > { %s1436_s9 = scalar_lea.vmem %s1705_s25, 256  ;;  %s1534_s12 = smov [#allocation10]  }
  0x65   : > { %p1437_p5 = scmp.ne.s32.totalorder %s1705_s25, %s1436_s9  ;;  %s1441_s22 = sshll.u32 %s1534_s12, 4  ;;  %s1442_s22 = int_to_ptr.vmem [resolvable:$false] %s1441_s22 }
  0x66   : > { %s1443_s23 = scalar_lea.vmem %s1442_s22, 512  ;;  %p1444_p10 = scmp.lt.s32.totalorder %s1705_s25, %s1442_s22 }
  0x67   : > { %p1439_p1 = pnand %p1437_p5, %p1397_p8  ;;  %p1445_p6 = scmp.lt.s32.totalorder %s1443_s23, %s1436_s9 }
  0x69   : > { %p1440_p7 = pneg %p1439_p1  ;;  %p1446_p11 = por %p1445_p6, %p1444_p10 }
  0x6b   : > { %p1447_p9 = pnand %p1446_p11, %p1440_p7 }
  0x6d   : > { %1450 = shalt.err (!%p1447_p9)
}
  0x6e   : > { %1303 = dma.hbm_to_vmem [thread:$0]  (!%p1643_p3), %s1703_s20, 256, %s1705_s25, %s205_s5, %s1532_s11, %s1532_s11, %s1533_s6  }
  0x6f   : > { %227 = sbr.rel (%p1624_p13) target bundleno = 640 (0x280), region = 36 }
  0x74   : > { %p2909_p8 = scmp.eq.s32.totalorder %s1585_s19, 0 }
  0x76   : > { %1494 = dma.done.wait (%p2909_p8), [#allocation6], 16   ;;  %p2910_p12 = pmov %p2909_p8 }
  0x77   : > { %p2911_p2 = pmov %p2909_p8 }
  0x78   : > { %1496 = vsyncadd (%p2910_p12), [#allocation6], 4294967280 }
  0x79   : > { %1498 = dma.done.wait (%p2911_p2), [#allocation7], 16   ;;  %p2912_p0 = pmov %p2911_p2 }
  0x7a   : > { %s1744_s0 = sand.u32 1, %s1519_s16   ;;  %p2915_p13 = scmp.ne.s32.totalorder %s2896_s26, 0 }
  0x7b   : > { %1500 = vsyncadd (%p2912_p0), [#allocation7], 4294967280  ;;  %2913 = sst [smem:[#allocation27_spill]] %s1744_s0  ;;  %s1185_s29 = sshll.u32 %s1744_s0, 6 }
  0x7c   : > { %s238_s8 = scalar_lea.sflag [#allocation4], %s1744_s0  ;;  %s1748_s11 = scalar_lea.vmem [#allocation9], %s1185_s29 }
  0x7d   : > { %2914 = sst [smem:[#allocation28_spill]] %s1748_s11 }
  0x7e   : > { %1502 = dma.done.wait (%p2915_p13), %s238_s8, 1024  }
  0x7f   : > { %1504 = vsyncadd (%p2915_p13), %s238_s8, 4294966272  ;;  %s1186_s6 = sshll.u32 %s1744_s0, 4  ;;  %s247_s20 = scalar_lea.sflag [#allocation11], %s1744_s0 }
  0x80   : > { %s1756_s25 = scalar_lea.vmem [#allocation10], %s1186_s6 }
  0x81   : > { %2916 = sst [smem:[#allocation29_spill]] %s1756_s25 }
  0x82   : > { %1506 = dma.done.wait (%p2915_p13), %s247_s20, 256  }
  0x83   : > { %1508 = vsyncadd (%p2915_p13), %s247_s20, 4294967040 }
  0x84   : > { %255 = sfence }
  0x85   : > { %v1763_v0 = vld [vmem:[%s1748_s11] sm:$0xff]  ;;  %s1535_s5 = smov 127   ;;  %s1536_s30 = smov 1   ;;  %v1770_v1 = vld [vmem:[%s1748_s11 + $0x8] sm:$0xff]  ;;  %v280_v2 = vlaneseq  ;;  %v1784_v8 = vld [vmem:[%s1748_s11 + $0x18] sm:$0xff]  ;;  %v1537_v36 = vmov 0.0  }
  0x86   : > { %308 = vrot.lane.b32.xlu1 %v1763_v0, %s1535_s5  ;;  %302 = vrot.lane.b32.xlu0 %v1763_v0, %s1536_s30  ;;  %v328_v3 = vrot.slane %v1763_v0, 7  ;;  %v329_v4 = vrot.slane %v1770_v1, 7  ;;  %v334_v5 = vrot.slane %v1763_v0, 1  ;;  %v335_v6 = vrot.slane %v1770_v1, 1  ;;  %v1787_v9 = vld [vmem:[%s1748_s11 + $0x10] sm:$0xff]  ;;  %v1816_v14 = vld [vmem:[%s1748_s11 + $0x28] sm:$0xff] }
  0x87   : > { %v1781_v7 = vshrl.u32 %v280_v2, 7  ;;  %v1819_v15 = vld [vmem:[%s1748_s11 + $0x20] sm:$0xff]  ;;  %v496_v16 = vrot.slane %v1784_v8, 7  ;;  %v495_v17 = vrot.slane %v1787_v9, 7  ;;  %v502_v18 = vrot.slane %v1784_v8, 1  ;;  %v1842_v22 = vld [vmem:[%s1748_s11 + $0x38] sm:$0xff] }
  0x88   : > { %v501_v19 = vrot.slane %v1787_v9, 1  ;;  %v1845_v23 = vld [vmem:[%s1748_s11 + $0x30] sm:$0xff]  ;;  %v663_v26 = vrot.slane %v1816_v14, 7  ;;  %v662_v27 = vrot.slane %v1819_v15, 7  ;;  %v669_v28 = vrot.slane %v1816_v14, 1  ;;  %s1883_s26 = sld [smem:[#allocation3 + $0x5]] }
  0x89   : > { %vm316_vm0 = vcmp.lt.s32.totalorder %v1781_v7, 1  ;;  %vm323_vm1 = vcmp.lt.s32.totalorder %v1781_v7, 7  ;;  %v668_v29 = vrot.slane %v1819_v15, 1  ;;  %s1885_s10 = sld [smem:[#allocation3 + $0x29]]  ;;  %v995_v34 = vld [vmem:[%s1756_s25] sm:$0xff]  ;;  %v996_v35 = vld [vmem:[%s1756_s25 + $0x8] sm:$0xff] }
  0x8a   : > { %310 = vrot.lane.b32.xlu1 %v1770_v1, %s1535_s5  ;;  %304 = vrot.lane.b32.xlu0 %v1770_v1, %s1536_s30  ;;  %v1793_v10 = vsel %vm316_vm0, %v328_v3, %v329_v4  ;;  %v1797_v11 = vsel %vm316_vm0, %v329_v4, %v328_v3  ;;  %v1805_v12 = vsel %vm323_vm1, %v334_v5, %v335_v6  ;;  %s1887_s7 = sld [smem:[#allocation3 + $0x3]]  ;;  %vm1009_vm2 = vcmp.ge.s32.totalorder %v995_v34, 0 }
  0x8b   : > { %v1809_v13 = vsel %vm323_vm1, %v335_v6, %v334_v5  ;;  %v1831_v20 = vsel %vm316_vm0, %v495_v17, %v496_v16  ;;  %v1839_v21 = vsel %vm316_vm0, %v496_v16, %v495_v17  ;;  %v1849_v24 = vsel %vm323_vm1, %v501_v19, %v502_v18  ;;  %s1889_s13 = sld [smem:[#allocation3 + $0x27]] }
  0x8c   : > { %v1853_v25 = vsel %vm323_vm1, %v502_v18, %v501_v19  ;;  %v1869_v30 = vsel %vm316_vm0, %v662_v27, %v663_v26  ;;  %v1873_v31 = vsel %vm316_vm0, %v663_v26, %v662_v27  ;;  %v1877_v32 = vsel %vm323_vm1, %v668_v29, %v669_v28  ;;  %s1891_s14 = sld [smem:[#allocation3 + $0x2]] }
  0x8d   : > { %v1881_v33 = vsel %vm323_vm1, %v669_v28, %v668_v29  ;;  %s1893_s9 = sld [smem:[#allocation3 + $0x8]]  ;;  %vm1010_vm3 = vcmp.ge.s32.totalorder %v996_v35, 0  ;;  %v1969_v37 = vsel %vm1009_vm2, 1.0, %v1537_v36  ;;  %v1972_v38 = vadd.s32 8, %v1781_v7 }
  0x8e   : > { %473 = vrot.lane.b32.xlu1 %v1784_v8, %s1536_s30  ;;  %471 = vrot.lane.b32.xlu0 %v1787_v9, %s1536_s30  ;;  %2917 = sst [smem:[#allocation30_spill]] %s1883_s26  ;;  %2945 = vst [vmem:[#allocation58_spill] sm:$0xff] %v1969_v37  ;;  %v1976_v39 = vsel %vm1010_vm3, 1.0, %v1537_v36  ;;  %v830_v41 = vrot.slane %v1842_v22, 7  ;;  %v836_v42 = vrot.slane %v1842_v22, 1  ;;  %v829_v43 = vrot.slane %v1845_v23, 7 }
  0x8f   : > { %2918 = sst [smem:[#allocation31_spill]] %s1885_s10  ;;  %2946 = vst [vmem:[#allocation59_spill] sm:$0xff] %v1976_v39  ;;  %v1029_v40 = vadd.f32 %v1976_v39, %v1969_v37  ;;  %v835_v44 = vrot.slane %v1845_v23, 1  ;;  %v1989_v45 = vand.u32 127, %v280_v2  ;;  %vm285_vm4 = vcmp.eq.s32.totalorder %v1781_v7, 0 }
  0x90   : > { %2919 = sst [smem:[#allocation32_spill]] %s1887_s7  ;;  %vm288_vm5 = vcmp.eq.s32.totalorder %v1972_v38, 15  ;;  %v332_v48 = vsel %vm285_vm4, 0.0, %v1797_v11  ;;  %v499_v6 = vsel %vm285_vm4, 0.0, %v1839_v21  ;;  %v666_v36 = vsel %vm285_vm4, 0.0, %v1873_v31 }
  0x91   : > { %2920 = sst [smem:[#allocation33_spill]] %s1889_s13  ;;  %v339_v52 = vsel %vm288_vm5, 0.0, %v1809_v13  ;;  %v506_v17 = vsel %vm288_vm5, 0.0, %v1853_v25  ;;  %vm290_vm6 = vcmp.eq.s32.totalorder %v1989_v45, 15  ;;  %vm289_vm7 = vcmp.eq.s32.totalorder %v1989_v45, 0 }
  0x92   : > { %479 = vrot.lane.b32.xlu1 %v1784_v8, %s1535_s5  ;;  %477 = vrot.lane.b32.xlu0 %v1787_v9, %s1535_s5  ;;  %2921 = sst [smem:[#allocation34_spill]] %s1891_s14  ;;  %v2214_v27 = vsel %vm316_vm0, %v829_v43, %v830_v41  ;;  %vm1039_vm12 = vcmp.eq.s32.totalorder %v1989_v45, 1 }
  0x93   : > { %2922 = sst [smem:[#allocation35_spill]] %s1893_s9  ;;  %2985 = vst [vmem:[#allocation71_spill] sm:$0xff] %v2214_v27 }
  0x94   : > { %s1895_s12 = sld [smem:[#allocation3 + $0x26]] }
  0x95   : > { %s1897_s22 = sld [smem:[#allocation3 + $0x2c]] }
  0x96   : > { %640 = vrot.lane.b32.xlu1 %v1816_v14, %s1536_s30  ;;  %638 = vrot.lane.b32.xlu0 %v1819_v15, %s1536_s30  ;;  %s1899_s23 = sld [smem:[#allocation3]] }
  0x97   : > { %s1901_s29 = sld [smem:[#allocation3 + $0x1]] }
  0x98   : > { %s1903_s8 = sld [smem:[#allocation3 + $0x4]] }
  0x99   : > { %s1905_s6 = sld [smem:[#allocation3 + $0x6]] }
  0x9a   : > { %646 = vrot.lane.b32.xlu1 %v1816_v14, %s1535_s5  ;;  %644 = vrot.lane.b32.xlu0 %v1819_v15, %s1535_s5  ;;  %2923 = sst [smem:[#allocation36_spill]] %s1895_s12 }
  0x9b   : > { %2924 = sst [smem:[#allocation37_spill]] %s1897_s22 }
  0x9c   : > { %2925 = sst [smem:[#allocation38_spill]] %s1899_s23 }
  0x9d   : > { %s1907_s20 = sld [smem:[#allocation3 + $0x7]]  ;;  %v361_v47 = vstv %s1901_s29 }
  0x9e   : > { %807 = vrot.lane.b32.xlu1 %v1842_v22, %s1536_s30  ;;  %805 = vrot.lane.b32.xlu0 %v1845_v23, %s1536_s30  ;;  %s1911_s30 = sld [smem:[#allocation3 + $0x25]]  ;;  %v379_v51 = vstv %s1903_s8  ;;  %v2019_v60 = vmul.f32 %v361_v47, %v332_v48  ;;  %v2029_v2 = vmul.f32 %v361_v47, %v1793_v10 }
  0x9f   : > { %2926 = sst [smem:[#allocation39_spill]] %s1905_s6  ;;  %v2024_v61 = vmul.f32 %v379_v51, %v1770_v1  ;;  %v2036_v5 = vmul.f32 %v379_v51, %v1763_v0 }
  0xa0   : > { %s1913_s1 = sld [smem:[#allocation3 + $0x28]] }
  0xa1   : > { %s1915_s2 = sld [smem:[#allocation3 + $0x2a]] }
  0xa2   : > { %813 = vrot.lane.b32.xlu1 %v1842_v22, %s1535_s5  ;;  %811 = vrot.lane.b32.xlu0 %v1845_v23, %s1535_s5  ;;  %s1909_s5 = sld [smem:[#allocation3 + $0x24]] }
  0xa3   : > { %s1917_s3 = sld [smem:[#allocation3 + $0x2b]]  ;;  %v397_v59 = vstv %s1907_s20 }
  0xa4   : > { %s1919_s24 = sld [smem:[#allocation8]]  ;;  %v419_v62 = vstv %s1911_s30  ;;  %v2045_v13 = vmul.f32 %v397_v59, %v1805_v12  ;;  %v2047_v16 = vmul.f32 %v397_v59, %v339_v52 }
  0xa5   : > { %s1921_s17 = sld [smem:[#allocation8 + $0x1]]  ;;  %v2058_v21 = vmul.f32 %v419_v62, %v332_v48  ;;  %v2061_v26 = vmul.f32 %v419_v62, %v1793_v10 }
  0xa6   : > { %s1923_s16 = sld [smem:[#allocation3 + $0xc]]  ;;  %v437_v63 = vstv %s1913_s1 }
  0xa7   : > { %2928 = sst [smem:[#allocation41_spill]] %s1915_s2  ;;  %v2055_v18 = vmul.f32 %v437_v63, %v1770_v1  ;;  %v2067_v25 = vmul.f32 %v437_v63, %v1763_v0 }
  0xa8   : > { %2927 = sst [smem:[#allocation40_spill]] %s1909_s5 }
  0xa9   : > { %s1925_s21 = sld [smem:[#allocation3 + $0x30]]  ;;  %v455_v4 = vstv %s1917_s3 }
  0xaa   : > { %2929 = sst [smem:[#allocation42_spill]] %s1919_s24  ;;  %v2070_v1 = vmul.f32 %v455_v4, %v1805_v12  ;;  %v2072_v28 = vmul.f32 %v455_v4, %v339_v52 }
  0xab   : > { %2930 = sst [smem:[#allocation43_spill]] %s1921_s17 }
  0xac   : > { %2931 = sst [smem:[#allocation44_spill]] %s1923_s16 }
  0xad   : > { %s1927_s18 = sld [smem:[#allocation3 + $0x9]] }
  0xae   : > { %s1929_s28 = sld [smem:[#allocation3 + $0xf]] }
  0xaf   : > { %2932 = sst [smem:[#allocation45_spill]] %s1925_s21 }
  0xb0   : > { %s1931_s15 = sld [smem:[#allocation3 + $0x2d]] }
  0xb1   : > { %s1933_s4 = sld [smem:[#allocation3 + $0x33]] }
  0xb2   : > { %s1935_s27 = sld [smem:[#allocation3 + $0xe]] }
  0xb3   : > { %2933 = sst [smem:[#allocation46_spill]] %s1927_s18 }
  0xb4   : > { %2934 = sst [smem:[#allocation47_spill]] %s1929_s28 }
  0xb5   : > { %s1937_s0 = sld [smem:[#allocation3 + $0x32]] }
  0xb6   : > { %2935 = sst [smem:[#allocation48_spill]] %s1931_s15 }
  0xb7   : > { %2936 = sst [smem:[#allocation49_spill]] %s1933_s4 }
  0xb8   : > { %2937 = sst [smem:[#allocation50_spill]] %s1935_s27 }
  0xb9   : > { %s1939_s19 = sld [smem:[#allocation3 + $0xa]] }
  0xba   : > { %s1941_s11 = sld [smem:[#allocation3 + $0xb]] }
  0xbb   : > { %2938 = sst [smem:[#allocation51_spill]] %s1937_s0 }
  0xbc   : > { %s1943_s16 = sld [smem:[#allocation3 + $0xd]] }
  0xbd   : > { %s1945_s21 = sld [smem:[#allocation3 + $0x10]] }
  0xbe   : > { %s1947_s18 = sld [smem:[#allocation3 + $0x11]] }
  0xbf   : > { %2939 = sst [smem:[#allocation52_spill]] %s1939_s19 }
  0xc0   : > { %2940 = sst [smem:[#allocation53_spill]] %s1941_s11 }
  0xc1   : > { %s1949_s28 = sld [smem:[#allocation3 + $0x2e]] }
  0xc2   : > { %s1951_s15 = sld [smem:[#allocation3 + $0x2f]]  ;;  %v546_v12 = vstv %s1943_s16 }
  0xc3   : > { %s1953_s4 = sld [smem:[#allocation3 + $0x31]]  ;;  %v564_v52 = vstv %s1945_s21  ;;  %v2104_v0 = vmul.f32 %v1787_v9, %v546_v12  ;;  %v2107_v47 = vmul.f32 %v1784_v8, %v546_v12 }
  0xc4   : > { %2941 = sst [smem:[#allocation54_spill]] %s1947_s18 }
  0xc5   : > { %s1955_s27 = sld [smem:[#allocation3 + $0x34]] }
  0xc6   : > { %s1957_s17 = sld [smem:[#allocation3 + $0x35]]  ;;  %1030 = vadd.xlane.f32.xlu1 %v1029_v40  ;;  %v2115_v40 = vmul.f32 %v564_v52, %v1849_v24 }
  0xc7   : > { %s1959_s0 = sld [smem:[#allocation3 + $0x15]]  ;;  %v586_v62 = vstv %s1949_s28 }
  0xc8   : > { %2942 = sst [smem:[#allocation55_spill]] %s1951_s15  ;;  %v2125_v34 = vmul.f32 %v586_v62, %v499_v6  ;;  %v2128_v59 = vmul.f32 %v586_v62, %v1831_v20 }
  0xc9   : > { %s1961_s19 = sld [smem:[#allocation3 + $0x39]]  ;;  %v604_v51 = vstv %s1953_s4 }
  0xca   : > { %s1964_s11 = sld [smem:[#allocation3 + $0x12]]  ;;  %v2137_v31 = vmul.f32 %v1787_v9, %v604_v51 }
  0xcb   : > { %s1967_s18 = sld [smem:[#allocation3 + $0x18]]  ;;  %v622_v48 = vstv %s1955_s27 }
  0xcc   : > { %2943 = sst [smem:[#allocation56_spill]] %s1957_s17  ;;  %v2144_v62 = vmul.f32 %v622_v48, %v1849_v24 }
  0xcd   : > { %s1974_s17 = sld [smem:[#allocation3 + $0x36]] }
  0xce   : > { %s1984_s25 = sld [smem:[#allocation3 + $0x17]]  ;;  %2971 = vst [vmem:[#allocation63_spill] sm:$0xff] %v2144_v62 }
  0xcf   : > { %2944 = sst [smem:[#allocation57_spill]] %s1961_s19 }
  0xd0   : > { %s1978_s19 = sld [smem:[#allocation3 + $0x3c]] }
  0xd1   : > { %s2008_s26 = sld [smem:[#allocation3 + $0x14]] }
  0xd2   : > { %s2014_s29 = sld [smem:[#allocation3 + $0x16]] }
  0xd3   : > { %s2021_s8 = sld [smem:[#allocation3 + $0x19]] }
  0xd4   : > { %2948 = sst [smem:[#allocation61_spill]] %s1984_s25 }
  0xd5   : > { %s2000_s25 = sld [smem:[#allocation3 + $0x13]] }
  0xd6   : > { %2947 = sst [smem:[#allocation60_spill]] %s1978_s19 }
  0xd7   : > { %s1992_s19 = sld [smem:[#allocation3 + $0x3b]] }
  0xd8   : > { %s2031_s12 = sld [smem:[#allocation3 + $0x1a]]  ;;  %v713_v19 = vstv %s2014_s29 }
  0xd9   : > { %s2041_s20 = sld [smem:[#allocation3 + $0x37]]  ;;  %v2170_v9 = vmul.f32 %v1819_v15, %v713_v19  ;;  %v2180_v57 = vmul.f32 %v1816_v14, %v713_v19 }
  0xda   : > { %s2951_s1 = sld [smem:[#allocation44_spill]] }
  0xdb   : > { %s2952_s30 = sld [smem:[#allocation45_spill]]  ;;  %v695_v29 = vstv %s2000_s25  ;;  %2978 = vst [vmem:[#allocation65_spill] sm:$0xff] %v2170_v9  ;;  %2981 = vst [vmem:[#allocation68_spill] sm:$0xff] %v2180_v57 }
  0xdc   : > { %s2953_s3 = sld [smem:[#allocation52_spill]]  ;;  %v2175_v12 = vmul.f32 %v695_v29, %v1869_v30 }
  0xdd   : > { %s2052_s6 = sld [smem:[#allocation3 + $0x38]] }
  0xde   : > { %2949 = sst [smem:[#allocation62_spill]] %s2031_s12  ;;  %2980 = vst [vmem:[#allocation67_spill] sm:$0xff] %v2175_v12 }
  0xdf   : > { %s2955_s9 = sld [smem:[#allocation46_spill]]  ;;  %v753_v24 = vstv %s2041_s20 }
  0xe0   : > { %s2957_s5 = sld [smem:[#allocation48_spill]]  ;;  %v2227_v56 = vmul.f32 %v753_v24, %v1869_v30 }
  0xe1   : > { %s2063_s23 = sld [smem:[#allocation3 + $0x3a]] }
  0xe2   : > { %s2074_s2 = sld [smem:[#allocation3 + $0x3d]]  ;;  %v528_v35 = vstv %s2953_s3  ;;  %2988 = vst [vmem:[#allocation74_spill] sm:$0xff] %v2227_v56 }
  0xe3   : > { %2954 = sst [smem:[#allocation44_spill]] %s2052_s6  ;;  %v2096_v63 = vmul.f32 %v528_v35, %v499_v6  ;;  %v2099_v4 = vmul.f32 %v528_v35, %v1831_v20  ;;  %v2117_v35 = vmul.f32 %v564_v52, %v506_v17  ;;  %v673_v52 = vsel %vm288_vm5, 0.0, %v1881_v33 }
  0xe4   : > { %s2080_s24 = sld [smem:[#allocation3 + $0x3e]]  ;;  %v2140_v6 = vmul.f32 %v1784_v8, %v604_v51  ;;  %v2148_v33 = vmul.f32 %v622_v48, %v506_v17  ;;  %v731_v17 = vstv %s2021_s8  ;;  %v2172_v8 = vmul.f32 %v695_v29, %v666_v36 }
  0xe5   : > { %s2092_s22 = sld [smem:[#allocation3 + $0x42]]  ;;  %v832_v20 = vsel %vm316_vm0, %v830_v41, %v829_v43  ;;  %v838_v29 = vsel %vm323_vm1, %v836_v42, %v835_v44  ;;  %v2201_v3 = vmul.f32 %v731_v17, %v1877_v32  ;;  %v2206_v10 = vmul.f32 %v731_v17, %v673_v52 }
  0xe6   : > { %s2101_s3 = sld [smem:[#allocation3 + $0x1b]]  ;;  %2973 = vst [vmem:[#allocation64_spill] sm:$0xff] %v2148_v33  ;;  %2979 = vst [vmem:[#allocation66_spill] sm:$0xff] %v2172_v8  ;;  %v2222_v48 = vsel %vm323_vm1, %v835_v44, %v836_v42  ;;  %v2224_v17 = vmul.f32 %v753_v24, %v666_v36  ;;  %v2233_v41 = vsel %vm285_vm4, 0.0, %v832_v20  ;;  %v2237_v43 = vsel %vm288_vm5, 0.0, %v838_v29 }
  0xe7   : > { %2958 = sst [smem:[#allocation45_spill]] %s2063_s23  ;;  %2982 = vst [vmem:[#allocation69_spill] sm:$0xff] %v2201_v3  ;;  %2984 = vst [vmem:[#allocation70_spill] sm:$0xff] %v2206_v10 }
  0xe8   : > { %s2086_s23 = sld [smem:[#allocation3 + $0x1e]]  ;;  %v789_v51 = vstv %s2074_s2  ;;  %2986 = vst [vmem:[#allocation72_spill] sm:$0xff] %v2222_v48  ;;  %2987 = vst [vmem:[#allocation73_spill] sm:$0xff] %v2224_v17 }
  0xe9   : > { %s2111_s21 = sld [smem:[#allocation3 + $0x21]]  ;;  %2989 = vst [vmem:[#allocation75_spill] sm:$0xff] %v2233_v41  ;;  %2990 = vst [vmem:[#allocation76_spill] sm:$0xff] %v2237_v43  ;;  %v2247_v36 = vmul.f32 %v789_v51, %v1877_v32  ;;  %v2251_v29 = vmul.f32 %v789_v51, %v673_v52 }
  0xea   : > { %s2122_s28 = sld [smem:[#allocation3 + $0x3f]] }
  0xeb   : > { %s2967_s4 = sld [smem:[#allocation57_spill]]  ;;  %2993 = vst [vmem:[#allocation79_spill] sm:$0xff] %v2247_v36  ;;  %2994 = vst [vmem:[#allocation80_spill] sm:$0xff] %v2251_v29 }
  0xec   : > { %s2133_s27 = sld [smem:[#allocation3 + $0x45]] }
  0xed   : > { %s2969_s12 = sld [smem:[#allocation60_spill]] }
  0xee   : > { %2963 = sst [smem:[#allocation52_spill]] %s2086_s23 }
  0xef   : > { %2966 = sst [smem:[#allocation46_spill]] %s2111_s21 }
  0xf0   : > { %s2970_s10 = sld [smem:[#allocation61_spill]] }
  0xf1   : > { %s2146_s7 = sld [smem:[#allocation3 + $0x20]] }
  0xf2   : > { %2968 = sst [smem:[#allocation48_spill]] %s2133_s27 }
  0xf3   : > { %s2153_s13 = sld [smem:[#allocation3 + $0x44]] }
  0xf4   : > { %s2159_s16 = sld [smem:[#allocation3 + $0x1c]] }
  0xf5   : > { %s2975_s15 = sld [smem:[#allocation62_spill]] }
  0xf6   : > { %s2976_s6 = sld [smem:[#allocation45_spill]] }
  0xf7   : > { %2972 = sst [smem:[#allocation57_spill]] %s2146_s7 }
  0xf8   : > { %s2165_s14 = sld [smem:[#allocation3 + $0x1f]]  ;;  %v309_v20 = vpop.permute.xlu1 %308  ;;  %v303_v24 = vpop.permute.xlu0 %302 }
  0xf9   : > { %2974 = sst [smem:[#allocation60_spill]] %s2153_s13  ;;  %v306_v49 = vsel %vm289_vm7, 0.0, %v303_v24 }
  0xfa   : > { %s2977_s25 = sld [smem:[#allocation44_spill]]  ;;  %v862_v55 = vstv %s2159_s16 }
  0xfb   : > { %s2177_s29 = sld [smem:[#allocation3 + $0x1d]]  ;;  %v2268_v39 = vmul.f32 %v862_v55, %v2233_v41  ;;  %v2271_v52 = vmul.f32 %v862_v55, %v2214_v27 }
  0xfc   : > { %s2183_s8 = sld [smem:[#allocation3 + $0x22]]  ;;  %v771_v19 = vstv %s2976_s6  ;;  %v305_v11 = vpop.permute.xlu0 %304 }
  0xfd   : > { %s2203_s20 = sld [smem:[#allocation3 + $0x23]]  ;;  %v2240_v42 = vmul.f32 %v1819_v15, %v771_v19  ;;  %v2243_v30 = vmul.f32 %v1816_v14, %v771_v19  ;;  %v312_v14 = vsel %vm290_vm6, 0.0, %v309_v20  ;;  %2995 = vst [vmem:[#allocation81_spill] sm:$0xff] %v2268_v39  ;;  %2997 = vst [vmem:[#allocation82_spill] sm:$0xff] %v2271_v52  ;;  %v311_v20 = vpop.permute.xlu1 %310  ;;  %v307_v15 = vsel %vm289_vm7, 0.0, %v305_v11 }
  0xfe   : > { %s2229_s2 = sld [smem:[#allocation3 + $0x40]]  ;;  %v880_v54 = vstv %s2165_s14  ;;  %v340_v51 = vrot.slane %v312_v14, 7  ;;  %v346_v53 = vrot.slane %v312_v14, 1  ;;  %v313_v55 = vsel %vm290_vm6, 0.0, %v311_v20 }
  0xff   : > { %2991 = vst [vmem:[#allocation77_spill] sm:$0xff] %v2240_v42  ;;  %2992 = vst [vmem:[#allocation78_spill] sm:$0xff] %v2243_v30  ;;  %s2249_s6 = sld [smem:[#allocation3 + $0x41]]  ;;  %v2274_v44 = vmul.f32 %v1845_v23, %v880_v54  ;;  %v2277_v58 = vmul.f32 %v1842_v22, %v880_v54  ;;  %v341_v32 = vrot.slane %v313_v55, 7  ;;  %v347_v23 = vrot.slane %v313_v55, 1 }
 0x100   : > { %s2996_s23 = sld [smem:[#allocation30_spill]]  ;;  %v315_v24 = vrot.slane %v307_v15, 7  ;;  %v314_v11 = vrot.slane %v306_v49, 7  ;;  %v321_v39 = vrot.slane %v306_v49, 1 }
 0x101   : > { %s2998_s14 = sld [smem:[#allocation31_spill]]  ;;  %2999 = vst [vmem:[#allocation83_spill] sm:$0xff] %v2274_v44  ;;  %3000 = vst [vmem:[#allocation84_spill] sm:$0xff] %v2277_v58  ;;  %v474_v36 = vpop.permute.xlu1 %473 }
 0x102   : > { %v898_v46 = vstv %s2183_s8  ;;  %s3001_s16 = sld [smem:[#allocation32_spill]] }
 0x103   : > { %2983 = sst [smem:[#allocation61_spill]] %s2203_s20  ;;  %v2287_v19 = vmul.f32 %v898_v46, %v2222_v48  ;;  %v2290_v22 = vmul.f32 %v898_v46, %v2237_v43 }
 0x104   : > { %s3002_s8 = sld [smem:[#allocation33_spill]] }
 0x105   : > { %3003 = vst [vmem:[#allocation85_spill] sm:$0xff] %v2287_v19  ;;  %3004 = vst [vmem:[#allocation86_spill] sm:$0xff] %v2290_v22  ;;  %s3007_s20 = sld [smem:[#allocation38_spill]]  ;;  %v343_v19 = vsel %vm316_vm0, %v341_v32, %v340_v51 }
 0x106   : > { %v3005_v54 = vstv %s2996_s23  ;;  %s3010_s27 = sld [smem:[#allocation34_spill]]  ;;  %v3011_v44 = vstv %s2996_s23 }
 0x107   : > { %v2294_v50 = vmul.f32 %v3005_v54, %v312_v14  ;;  %v3006_v20 = vstv %s2998_s14  ;;  %v349_v54 = vsel %vm323_vm1, %v347_v23, %v346_v53  ;;  %s3012_s13 = sld [smem:[#allocation35_spill]]  ;;  %v387_v37 = vmul.f32 %v3011_v44, %v313_v55 }
 0x108   : > { %v2300_v58 = vmul.f32 %v3006_v20, %v312_v14  ;;  %v3008_v48 = vstv %s3001_s16  ;;  %v342_v14 = vsel %vm316_vm0, %v340_v51, %v341_v32  ;;  %s3013_s7 = sld [smem:[#allocation40_spill]]  ;;  %v348_v20 = vsel %vm323_vm1, %v346_v53, %v347_v23 }
 0x109   : > { %v374_v46 = vmul.f32 %v3008_v48, %v306_v49  ;;  %v3014_v52 = vstv %s2998_s14  ;;  %s3015_s21 = sld [smem:[#allocation42_spill]]  ;;  %v317_v44 = vsel %vm316_vm0, %v314_v11, %v315_v24  ;;  %v318_v32 = vsel %vm316_vm0, %v315_v24, %v314_v11 }
 0x10a   : > { %v3009_v22 = vstv %s3002_s8  ;;  %v2318_v48 = vmul.f32 %v3014_v52, %v313_v55  ;;  %v3016_v51 = vstv %s3001_s16  ;;  %s3017_s23 = sld [smem:[#allocation43_spill]]  ;;  %v351_v52 = vsel %vm288_vm5, 0.0, %v349_v54 }
 0x10b   : > { %v432_v43 = vmul.f32 %v3009_v22, %v306_v49  ;;  %v322_v49 = vrot.slane %v307_v15, 1  ;;  %v344_v22 = vsel %vm285_vm4, 0.0, %v343_v19  ;;  %v375_v53 = vmul.f32 %v3016_v51, %v307_v15  ;;  %s3020_s14 = sld [smem:[#allocation36_spill]] }
 0x10c   : > { %v319_v55 = vsel %vm285_vm4, 0.0, %v318_v32  ;;  %v3018_v23 = vstv %s3007_s20  ;;  %v3019_v27 = vstv %s3002_s8  ;;  %v3021_v3 = vstv %s3010_s27  ;;  %s3031_s16 = sld [smem:[#allocation37_spill]] }
 0x10d   : > { %v357_v19 = vmul.f32 %v3018_v23, %v317_v44  ;;  %v433_v29 = vmul.f32 %v3019_v27, %v307_v15  ;;  %v369_v10 = vmul.f32 %v3021_v3, %v342_v14  ;;  %v3022_v24 = vstv %s3012_s13  ;;  %s3036_s13 = sld [smem:[#allocation41_spill]] }
 0x10e   : > { %v2340_v11 = vmul.f32 %v3022_v24, %v348_v20  ;;  %v3023_v51 = vmov %v3018_v23  ;;  %v3024_v42 = vstv %s3013_s7  ;;  %v3025_v9 = vmov %v3021_v3  ;;  %s3035_s7 = sld [smem:[#allocation39_spill]] }
 0x10f   : > { %v356_v30 = vmul.f32 %v3023_v51, %v319_v55  ;;  %v414_v54 = vmul.f32 %v3024_v42, %v319_v55  ;;  %v368_v57 = vmul.f32 %v3025_v9, %v344_v22  ;;  %v325_v32 = vsel %vm323_vm1, %v322_v49, %v321_v39  ;;  %v472_v55 = vpop.permute.xlu0 %471  ;;  %s3057_s27 = sld [smem:[#allocation50_spill]] }
 0x110   : > { %v3026_v23 = vstv %s3015_s21  ;;  %v3027_v27 = vmov %v3024_v42  ;;  %v3028_v17 = vmov %v3022_v24  ;;  %v3030_v24 = vstv %s3017_s23  ;;  %s3055_s21 = sld [smem:[#allocation49_spill]] }
 0x111   : > { %v359_v56 = vadd.f32 %v357_v19, %v3026_v23  ;;  %v415_v15 = vmul.f32 %v3027_v27, %v317_v44  ;;  %v2356_v12 = vmul.f32 %v3028_v17, %v351_v52  ;;  %v3029_v3 = vmov %v3026_v23  ;;  %s3066_s20 = sld [smem:[#allocation54_spill]] }
 0x112   : > { %v358_v8 = vadd.f32 %v356_v30, %v3029_v3  ;;  %v416_v41 = vadd.f32 %v414_v54, %v3030_v24  ;;  %v476_v42 = vsel %vm289_vm7, 0.0, %v474_v36  ;;  %v3032_v9 = vstv %s3020_s14  ;;  %s3070_s8 = sld [smem:[#allocation56_spill]] }
 0x113   : > { %v426_v51 = vmul.f32 %v3032_v9, %v344_v22  ;;  %v3033_v33 = vmov %v3032_v9  ;;  %v365_v19 = vadd.f32 %v2029_v2, %v359_v56  ;;  %v3034_v44 = vmov %v3030_v24  ;;  %s2514_s23 = sld [smem:[#allocation3 + $0x43]] }
 0x114   : > { %v427_v62 = vmul.f32 %v3033_v33, %v342_v14  ;;  %v417_v17 = vadd.f32 %v415_v15, %v3034_v44  ;;  %v324_v30 = vsel %vm323_vm1, %v321_v39, %v322_v49  ;;  %v327_v54 = vsel %vm288_vm5, 0.0, %v325_v32 }
 0x115   : > { %v364_v36 = vadd.f32 %v2019_v60, %v358_v8  ;;  %v422_v23 = vadd.f32 %v2058_v21, %v416_v41  ;;  %v371_v22 = vadd.f32 %v369_v10, %v365_v19  ;;  %v484_v14 = vrot.slane %v476_v42, 7 }
 0x116   : > { %v423_v33 = vadd.f32 %v2061_v26, %v417_v17  ;;  %v2380_v56 = vsel %vm289_vm7, 0.0, %v472_v55  ;;  %v3037_v2 = vstv %s3031_s16  ;;  %v3039_v21 = vstv %s3035_s7  ;;  %s3160_s7 = sld [smem:[#allocation91_spill]] }
 0x117   : > { %v462_v39 = vmul.f32 %v3037_v2, %v348_v20  ;;  %v370_v49 = vadd.f32 %v368_v57, %v364_v36  ;;  %v428_v27 = vadd.f32 %v426_v51, %v422_v23  ;;  %v483_v32 = vrot.slane %v2380_v56, 7  ;;  %v480_v36 = vpop.permute.xlu1 %479 }
 0x118   : > { %v3038_v15 = vmov %v3037_v2  ;;  %v377_v8 = vadd.f32 %v375_v53, %v371_v22  ;;  %v392_v41 = vmul.f32 %v3039_v21, %v324_v30  ;;  %v429_v10 = vadd.f32 %v427_v62, %v423_v33 }
 0x119   : > { %v463_v60 = vmul.f32 %v3038_v15, %v351_v52  ;;  %v376_v26 = vadd.f32 %v374_v46, %v370_v49  ;;  %v3040_v3 = vmov %v3039_v21  ;;  %v434_v9 = vadd.f32 %v432_v43, %v428_v27 }
 0x11a   : > { %v393_v24 = vmul.f32 %v3040_v3, %v327_v54  ;;  %v3041_v55 = vstv %s3036_s13  ;;  %v383_v20 = vadd.f32 %v2024_v61, %v377_v8  ;;  %v435_v57 = vadd.f32 %v433_v29, %v429_v10 }
 0x11b   : > { %v450_v19 = vmul.f32 %v3041_v55, %v324_v30  ;;  %v3042_v51 = vmov %v3041_v55  ;;  %v486_v52 = vsel %vm316_vm0, %v484_v14, %v483_v32  ;;  %v382_v53 = vadd.f32 %v2036_v5, %v376_v26 }
 0x11c   : > { %v451_v44 = vmul.f32 %v3042_v51, %v327_v54  ;;  %v440_v62 = vadd.f32 %v2067_v25, %v434_v9  ;;  %v490_v46 = vrot.slane %v476_v42, 1  ;;  %v489_v17 = vrot.slane %v2380_v56, 1 }
 0x11d   : > { %v389_v43 = vadd.f32 %v387_v37, %v383_v20  ;;  %v441_v30 = vadd.f32 %v2055_v18, %v435_v57  ;;  %v3043_v23 = vstv %s2951_s1  ;;  %v3044_v29 = vstv %s2952_s30  ;;  %s3050_s1 = sld [smem:[#allocation47_spill]] }
 0x11e   : > { %v2404_v61 = vmul.f32 %v3043_v23, %v476_v42  ;;  %v2408_v54 = vmul.f32 %v3044_v29, %v476_v42  ;;  %v388_v22 = vadd.f32 %v2294_v50, %v382_v53  ;;  %v446_v5 = vadd.f32 %v2300_v58, %v440_v62  ;;  %s3064_s30 = sld [smem:[#allocation51_spill]] }
 0x11f   : > { %v485_v25 = vsel %vm316_vm0, %v483_v32, %v484_v14  ;;  %v487_v37 = vsel %vm285_vm4, 0.0, %v486_v52  ;;  %v395_v18 = vadd.f32 %v393_v24, %v389_v43  ;;  %v447_v33 = vadd.f32 %v2318_v48, %v441_v30  ;;  %v478_v32 = vpop.permute.xlu0 %477 }
 0x120   : > { %v3045_v2 = vmov %v3043_v23  ;;  %v2422_v49 = vsel %vm290_vm6, 0.0, %v480_v36  ;;  %v394_v50 = vadd.f32 %v392_v41, %v388_v22  ;;  %v452_v58 = vadd.f32 %v450_v19, %v446_v5 }
 0x121   : > { %v541_v42 = vmul.f32 %v3045_v2, %v2380_v56  ;;  %v491_v14 = vsel %vm323_vm1, %v489_v17, %v490_v46  ;;  %v492_v27 = vsel %vm323_vm1, %v490_v46, %v489_v17  ;;  %v401_v15 = vadd.f32 %v2047_v16, %v395_v18 }
 0x122   : > { %v453_v48 = vadd.f32 %v451_v44, %v447_v33  ;;  %v3046_v8 = vstv %s2955_s9  ;;  %v400_v3 = vadd.f32 %v2045_v13, %v394_v50  ;;  %v458_v24 = vadd.f32 %v2070_v1, %v452_v58  ;;  %s3051_s9 = sld [smem:[#allocation53_spill]] }
 0x123   : > { %v523_v21 = vmul.f32 %v3046_v8, %v487_v37  ;;  %v3047_v10 = vmov %v3046_v8  ;;  %v3048_v41 = vstv %s2957_s5  ;;  %v508_v55 = vrot.slane %v2422_v49, 7  ;;  %s3052_s5 = sld [smem:[#allocation55_spill]] }
 0x124   : > { %v524_v26 = vmul.f32 %v3047_v10, %v485_v25  ;;  %v581_v9 = vmul.f32 %v3048_v41, %v487_v37  ;;  %v459_v19 = vadd.f32 %v2072_v28, %v453_v48  ;;  %v407_v20 = vadd.f32 %v2356_v12, %v401_v15  ;;  %v639_v10 = vpop.permute.xlu0 %638 }
 0x125   : > { %v3049_v57 = vmov %v3048_v41  ;;  %v481_v51 = vsel %vm290_vm6, 0.0, %v478_v32  ;;  %v406_v44 = vadd.f32 %v2340_v11, %v400_v3  ;;  %v464_v13 = vadd.f32 %v462_v39, %v458_v24  ;;  %v641_v39 = vpop.permute.xlu1 %640 }
 0x126   : > { %v582_v16 = vmul.f32 %v3049_v57, %v485_v25  ;;  %v494_v1 = vsel %vm288_vm5, 0.0, %v492_v27  ;;  %v507_v52 = vrot.slane %v481_v51, 7  ;;  %v465_v53 = vadd.f32 %v463_v60, %v459_v19 }
 0x127   : > { %v526_v28 = vadd.f32 %v524_v26, %v407_v20  ;;  %v514_v12 = vrot.slane %v2422_v49, 1  ;;  %v513_v62 = vrot.slane %v481_v51, 1  ;;  %v525_v46 = vadd.f32 %v523_v21, %v406_v44 }
 0x128   : > { %v583_v17 = vadd.f32 %v581_v9, %v464_v13  ;;  %v509_v36 = vsel %vm316_vm0, %v507_v52, %v508_v55  ;;  %v510_v11 = vsel %vm316_vm0, %v508_v55, %v507_v52  ;;  %v3053_v43 = vstv %s3050_s1 }
 0x129   : > { %v559_v30 = vmul.f32 %v3053_v43, %v491_v14  ;;  %v584_v60 = vadd.f32 %v582_v16, %v465_v53  ;;  %v3054_v23 = vmov %v3044_v29  ;;  %v511_v22 = vsel %vm285_vm4, 0.0, %v510_v11 }
 0x12a   : > { %v599_v29 = vmul.f32 %v3054_v23, %v2380_v56  ;;  %v3056_v5 = vmov %v3053_v43  ;;  %v531_v37 = vadd.f32 %v2096_v63, %v525_v46  ;;  %v532_v18 = vadd.f32 %v2099_v4, %v526_v28 }
 0x12b   : > { %v560_v25 = vmul.f32 %v3056_v5, %v494_v1  ;;  %v3058_v33 = vstv %s3051_s9  ;;  %v516_v50 = vsel %vm323_vm1, %v514_v12, %v513_v62  ;;  %v589_v56 = vadd.f32 %v2125_v34, %v583_v17 }
 0x12c   : > { %v535_v2 = vmul.f32 %v3058_v33, %v511_v22  ;;  %v3059_v58 = vmov %v3058_v33  ;;  %v2472_v32 = vsel %vm289_vm7, 0.0, %v641_v39  ;;  %v590_v48 = vadd.f32 %v2128_v59, %v584_v60 }
 0x12d   : > { %v536_v27 = vmul.f32 %v3059_v58, %v509_v36  ;;  %v3060_v8 = vstv %s3052_s5  ;;  %v3062_v26 = vstv %s3055_s21  ;;  %v3065_v34 = vstv %s3057_s27  ;;  %s1538_s5 = smov [#allocation12]  }
 0x12e   : > { %v537_v15 = vadd.f32 %v535_v2, %v531_v37  ;;  %v593_v63 = vmul.f32 %v3060_v8, %v511_v22  ;;  %v3061_v21 = vmov %v3060_v8  ;;  %v617_v3 = vmul.f32 %v3062_v26, %v491_v14  ;;  %v645_v8 = vpop.permute.xlu0 %644  ;;  %s1455_s21 = sshll.u32 %s1538_s5, 4  ;;  %s1456_s21 = int_to_ptr.vmem [resolvable:$false] %s1455_s21 }
 0x12f   : > { %v594_v4 = vmul.f32 %v3061_v21, %v509_v36  ;;  %v3063_v24 = vmov %v3062_v26  ;;  %v538_v9 = vadd.f32 %v536_v27, %v532_v18  ;;  %v553_v55 = vmul.f32 %v3065_v34, %v481_v51  ;;  %s1457_s27 = scalar_lea.vmem %s1456_s21, 32 }
 0x130   : > { %v618_v41 = vmul.f32 %v3063_v24, %v494_v1  ;;  %v515_v19 = vsel %vm323_vm1, %v513_v62, %v514_v12  ;;  %v543_v20 = vadd.f32 %v541_v42, %v537_v15  ;;  %v595_v59 = vadd.f32 %v593_v63, %v589_v56 }
 0x131   : > { %v596_v57 = vadd.f32 %v594_v4, %v590_v48  ;;  %v518_v16 = vsel %vm288_vm5, 0.0, %v516_v50  ;;  %v544_v14 = vadd.f32 %v2404_v61, %v538_v9  ;;  %v651_v44 = vrot.slane %v2472_v32, 7  ;;  %v647_v48 = vpop.permute.xlu1 %646  ;;  %v3078_v9 = vld [vmem:[#allocation63_spill] sm:$0xff] }
 0x132   : > { %v642_v13 = vsel %vm289_vm7, 0.0, %v639_v10  ;;  %v549_v1 = vadd.f32 %v2104_v0, %v543_v20  ;;  %v601_v52 = vadd.f32 %v599_v29, %v595_v59  ;;  %v3067_v28 = vmov %v3065_v34  ;;  %v3081_v59 = vld [vmem:[#allocation75_spill] sm:$0xff] }
 0x133   : > { %v602_v53 = vadd.f32 %v2408_v54, %v596_v57  ;;  %v650_v42 = vrot.slane %v642_v13, 7  ;;  %v554_v12 = vmul.f32 %v3067_v28, %v2422_v49  ;;  %v3068_v62 = vstv %s3064_s30 }
 0x134   : > { %v612_v46 = vmul.f32 %v3068_v62, %v2422_v49  ;;  %v550_v61 = vadd.f32 %v2107_v47, %v544_v14  ;;  %v3069_v17 = vmov %v3068_v62  ;;  %v555_v11 = vadd.f32 %v553_v55, %v549_v1 }
 0x135   : > { %v611_v36 = vmul.f32 %v3069_v17, %v481_v51  ;;  %v3071_v39 = vstv %s3066_s20  ;;  %v607_v0 = vadd.f32 %v2137_v31, %v601_v52  ;;  %v608_v54 = vadd.f32 %v2140_v6, %v602_v53 }
 0x136   : > { %v571_v43 = vmul.f32 %v3071_v39, %v515_v19  ;;  %v556_v60 = vadd.f32 %v554_v12, %v550_v61  ;;  %v3072_v23 = vmov %v3071_v39  ;;  %v652_v49 = vsel %vm316_vm0, %v650_v42, %v651_v44 }
 0x137   : > { %v572_v29 = vmul.f32 %v3072_v23, %v518_v16  ;;  %v653_v47 = vsel %vm316_vm0, %v651_v44, %v650_v42  ;;  %v561_v51 = vadd.f32 %v559_v30, %v555_v11  ;;  %v613_v22 = vadd.f32 %v611_v36, %v607_v0  ;;  %v3087_v23 = vld [vmem:[#allocation67_spill] sm:$0xff] }
 0x138   : > { %v614_v5 = vadd.f32 %v612_v46, %v608_v54  ;;  %v654_v31 = vsel %vm285_vm4, 0.0, %v653_v47  ;;  %v562_v6 = vadd.f32 %v560_v25, %v556_v60  ;;  %v3073_v37 = vstv %s3070_s8  ;;  %v3086_v54 = vld [vmem:[#allocation66_spill] sm:$0xff] }
 0x139   : > { %v629_v18 = vmul.f32 %v3073_v37, %v515_v19  ;;  %v3074_v33 = vmov %v3073_v37  ;;  %v657_v50 = vrot.slane %v2472_v32, 1  ;;  %v567_v58 = vadd.f32 %v2115_v40, %v561_v51  ;;  %v3079_v40 = vld [vmem:[#allocation64_spill] sm:$0xff] }
 0x13a   : > { %v630_v2 = vmul.f32 %v3074_v33, %v518_v16  ;;  %v619_v27 = vadd.f32 %v617_v3, %v613_v22  ;;  %v620_v30 = vadd.f32 %v618_v41, %v614_v5  ;;  %v3075_v56 = vstv %s1964_s11  ;;  %s3136_s11 = sld [smem:[#allocation60_spill]] }
 0x13b   : > { %v690_v15 = vmul.f32 %v3075_v56, %v654_v31  ;;  %v568_v63 = vadd.f32 %v2117_v35, %v562_v6  ;;  %v656_v25 = vrot.slane %v642_v13, 1  ;;  %v3076_v21 = vmov %v3075_v56 }
 0x13c   : > { %v691_v4 = vmul.f32 %v3076_v21, %v652_v49  ;;  %v3077_v10 = vstv %s1974_s17  ;;  %v573_v24 = vadd.f32 %v571_v43, %v567_v58  ;;  %v625_v34 = vadd.f32 %v3078_v9, %v619_v27  ;;  %s2609_s17 = sld [smem:[#allocation3 + $0x46]] }
 0x13d   : > { %v748_v26 = vmul.f32 %v3077_v10, %v654_v31  ;;  %v626_v3 = vadd.f32 %v3079_v40, %v620_v30  ;;  %v3080_v55 = vmov %v3077_v10  ;;  %v574_v19 = vadd.f32 %v572_v29, %v568_v63  ;;  %v3092_v30 = vld [vmem:[#allocation73_spill] sm:$0xff] }
 0x13e   : > { %v749_v41 = vmul.f32 %v3080_v55, %v652_v49  ;;  %v649_v20 = vsel %vm290_vm6, 0.0, %v647_v48  ;;  %v648_v35 = vsel %vm290_vm6, 0.0, %v645_v8  ;;  %v3082_v57 = vstv %s2229_s2 }
 0x13f   : > { %v2542_v16 = vmul.f32 %v3082_v57, %v3081_v59  ;;  %v631_v14 = vadd.f32 %v629_v18, %v625_v34  ;;  %v632_v44 = vadd.f32 %v630_v2, %v626_v3  ;;  %v692_v1 = vadd.f32 %v690_v15, %v573_v24  ;;  %v808_v2 = vpop.permute.xlu1 %807  ;;  %v3093_v15 = vld [vmem:[#allocation74_spill] sm:$0xff] }
 0x140   : > { %v675_v52 = vrot.slane %v649_v20, 7  ;;  %v3083_v53 = vstv %s1959_s0  ;;  %v659_v28 = vsel %vm323_vm1, %v657_v50, %v656_v25  ;;  %v693_v12 = vadd.f32 %v691_v4, %v574_v19  ;;  %s3130_s0 = sld [smem:[#allocation57_spill]] }
 0x141   : > { %v709_v42 = vmul.f32 %v3083_v53, %v2472_v32  ;;  %v938_v62 = vstv %s2514_s23  ;;  %v658_v46 = vsel %vm323_vm1, %v656_v25, %v657_v50  ;;  %v750_v61 = vadd.f32 %v748_v26, %v631_v14  ;;  %v806_v50 = vpop.permute.xlu0 %805 }
 0x142   : > { %v751_v17 = vadd.f32 %v749_v41, %v632_v44  ;;  %v674_v36 = vrot.slane %v648_v35, 7  ;;  %v3084_v11 = vstv %s2967_s4  ;;  %v3085_v43 = vmov %v3083_v53  ;;  %s3159_s4 = sld [smem:[#allocation25_spill]] }
 0x143   : > { %v767_v39 = vmul.f32 %v3084_v11, %v2472_v32  ;;  %v708_v0 = vmul.f32 %v3085_v43, %v642_v13  ;;  %v698_v60 = vadd.f32 %v3086_v54, %v692_v1  ;;  %v699_v29 = vadd.f32 %v3087_v23, %v693_v12  ;;  %v3104_v23 = vld [vmem:[#allocation77_spill] sm:$0xff] }
 0x144   : > { %v661_v49 = vsel %vm288_vm5, 0.0, %v659_v28  ;;  %v3088_v47 = vmov %v3084_v11  ;;  %v676_v22 = vsel %vm316_vm0, %v674_v36, %v675_v52  ;;  %v677_v32 = vsel %vm316_vm0, %v675_v52, %v674_v36  ;;  %v3100_v28 = vld [vmem:[#allocation68_spill] sm:$0xff]  ;;  %v3101_v36 = vld [vmem:[#allocation65_spill] sm:$0xff] }
 0x145   : > { %v766_v51 = vmul.f32 %v3088_v47, %v642_v13  ;;  %v3089_v5 = vstv %s1967_s18  ;;  %v681_v6 = vrot.slane %v649_v20, 1  ;;  %v678_v37 = vsel %vm285_vm4, 0.0, %v677_v32  ;;  %v3105_v47 = vld [vmem:[#allocation78_spill] sm:$0xff]  ;;  %s2629_s18 = sld [smem:[#allocation3 + $0x47]] }
 0x146   : > { %v726_v31 = vmul.f32 %v3089_v5, %v658_v46  ;;  %v3090_v18 = vstv %s2008_s26  ;;  %v680_v13 = vrot.slane %v648_v35, 1  ;;  %v756_v56 = vadd.f32 %v3092_v30, %v750_v61  ;;  %s3139_s26 = sld [smem:[#allocation48_spill]] }
 0x147   : > { %v703_v33 = vmul.f32 %v3090_v18, %v676_v22  ;;  %v3091_v58 = vmov %v3090_v18  ;;  %v757_v48 = vadd.f32 %v3093_v15, %v751_v17  ;;  %v3094_v8 = vmov %v3089_v5  ;;  %v3110_v15 = vld [vmem:[#allocation70_spill] sm:$0xff] }
 0x148   : > { %v702_v27 = vmul.f32 %v3091_v58, %v678_v37  ;;  %v727_v63 = vmul.f32 %v3094_v8, %v661_v49  ;;  %v3095_v21 = vstv %s2977_s25  ;;  %v3097_v24 = vstv %s2969_s12  ;;  %s3147_s12 = sld [smem:[#allocation61_spill]]  ;;  %p3161_p4 = scmp.ne.s32.totalorder %s3159_s4, 0 }
 0x149   : > { %v705_v25 = vadd.f32 %v703_v33, %v699_v29  ;;  %v760_v4 = vmul.f32 %v3095_v21, %v678_v37  ;;  %v3096_v10 = vmov %v3095_v21  ;;  %v784_v9 = vmul.f32 %v3097_v24, %v658_v46 }
 0x14a   : > { %v761_v26 = vmul.f32 %v3096_v10, %v676_v22  ;;  %v704_v34 = vadd.f32 %v702_v27, %v698_v60  ;;  %v2587_v40 = vsel %vm289_vm7, 0.0, %v808_v2  ;;  %v2591_v3 = vsel %vm289_vm7, 0.0, %v806_v50  ;;  %v812_v10 = vpop.permute.xlu0 %811 }
 0x14b   : > { %v3098_v55 = vstv %s2970_s10  ;;  %v711_v19 = vadd.f32 %v709_v42, %v705_v25  ;;  %v762_v59 = vadd.f32 %v760_v4, %v756_v56  ;;  %v3099_v14 = vstv %s1992_s19  ;;  %v814_v4 = vpop.permute.xlu1 %813  ;;  %s3120_s19 = sld [smem:[#allocation52_spill]] }
 0x14c   : > { %v721_v41 = vmul.f32 %v3098_v55, %v649_v20  ;;  %v763_v57 = vadd.f32 %v761_v26, %v757_v48  ;;  %v779_v44 = vmul.f32 %v3099_v14, %v649_v20  ;;  %v683_v1 = vsel %vm323_vm1, %v681_v6, %v680_v13  ;;  %v3112_v26 = vld [vmem:[#allocation69_spill] sm:$0xff]  ;;  %s3145_s10 = sld [smem:[#allocation29_spill]] }
 0x14d   : > { %v710_v52 = vadd.f32 %v708_v0, %v704_v34  ;;  %v818_v53 = vrot.slane %v2587_v40, 7  ;;  %v717_v12 = vadd.f32 %v3100_v28, %v711_v19  ;;  %v768_v46 = vadd.f32 %v766_v51, %v762_v59 }
 0x14e   : > { %v769_v61 = vadd.f32 %v767_v39, %v763_v57  ;;  %v817_v17 = vrot.slane %v2591_v3, 7  ;;  %v682_v42 = vsel %vm323_vm1, %v680_v13, %v681_v6  ;;  %v3102_v43 = vmov %v3098_v55 }
 0x14f   : > { %v716_v11 = vadd.f32 %v3101_v36, %v710_v52  ;;  %v720_v20 = vmul.f32 %v3102_v43, %v648_v35  ;;  %v3103_v54 = vmov %v3099_v14  ;;  %v685_v0 = vsel %vm288_vm5, 0.0, %v683_v1  ;;  %v3116_v14 = vld [vmem:[#allocation79_spill] sm:$0xff]  ;;  %v3117_v1 = vld [vmem:[#allocation80_spill] sm:$0xff] }
 0x150   : > { %v778_v60 = vmul.f32 %v3103_v54, %v648_v35  ;;  %v723_v39 = vadd.f32 %v721_v41, %v717_v12  ;;  %v774_v29 = vadd.f32 %v3104_v23, %v768_v46  ;;  %v775_v51 = vadd.f32 %v3105_v47, %v769_v61 }
 0x151   : > { %v3106_v22 = vmov %v3097_v24  ;;  %v722_v5 = vadd.f32 %v720_v20, %v716_v11  ;;  %v819_v6 = vsel %vm316_vm0, %v817_v17, %v818_v53  ;;  %v820_v35 = vsel %vm316_vm0, %v818_v53, %v817_v17 }
 0x152   : > { %v785_v32 = vmul.f32 %v3106_v22, %v661_v49  ;;  %v729_v37 = vadd.f32 %v727_v63, %v723_v39  ;;  %v780_v18 = vadd.f32 %v778_v60, %v774_v29  ;;  %v781_v33 = vadd.f32 %v779_v44, %v775_v51  ;;  %v3121_v60 = vld [vmem:[#allocation71_spill] sm:$0xff] }
 0x153   : > { %v821_v2 = vsel %vm285_vm4, 0.0, %v820_v35  ;;  %v728_v50 = vadd.f32 %v726_v31, %v722_v5  ;;  %v3107_v13 = vstv %s2975_s15  ;;  %v3109_v30 = vstv %s2080_s24  ;;  %s3119_s15 = sld [smem:[#allocation28_spill]]  ;;  %v3123_v35 = vld [vmem:[#allocation82_spill] sm:$0xff] }
 0x154   : > { %v738_v49 = vmul.f32 %v3107_v13, %v682_v42  ;;  %v3108_v58 = vmov %v3107_v13  ;;  %v796_v56 = vmul.f32 %v3109_v30, %v682_v42  ;;  %v735_v48 = vadd.f32 %v3110_v15, %v729_v37  ;;  %s3129_s24 = sld [smem:[#allocation46_spill]] }
 0x155   : > { %v739_v27 = vmul.f32 %v3108_v58, %v685_v0  ;;  %v786_v8 = vadd.f32 %v784_v9, %v780_v18  ;;  %v787_v63 = vadd.f32 %v785_v32, %v781_v33  ;;  %v3111_v25 = vstv %s2101_s3  ;;  %v3124_v18 = vld [vmem:[#allocation72_spill] sm:$0xff]  ;;  %v3126_v58 = vld [vmem:[#allocation81_spill] sm:$0xff]  ;;  %s3158_s3 = sld [smem:[#allocation27_spill]] }
 0x156   : > { %v858_v21 = vmul.f32 %v3111_v25, %v819_v6  ;;  %v734_v31 = vadd.f32 %v3112_v26, %v728_v50  ;;  %v3113_v24 = vmov %v3109_v30  ;;  %v3114_v55 = vmov %v3111_v25 }
 0x157   : > { %v797_v34 = vmul.f32 %v3113_v24, %v685_v0  ;;  %v857_v41 = vmul.f32 %v3114_v55, %v821_v2  ;;  %v3115_v19 = vstv %s2122_s28  ;;  %v741_v57 = vadd.f32 %v739_v27, %v735_v48 }
 0x158   : > { %v915_v59 = vmul.f32 %v3115_v19, %v821_v2  ;;  %v792_v44 = vadd.f32 %v3116_v14, %v786_v8  ;;  %v793_v52 = vadd.f32 %v3117_v1, %v787_v63  ;;  %v3118_v9 = vmov %v3115_v19 }
 0x159   : > { %v916_v53 = vmul.f32 %v3118_v9, %v819_v6  ;;  %v740_v28 = vadd.f32 %v738_v49, %v734_v31  ;;  %v2647_v12 = vsel %vm290_vm6, 0.0, %v814_v4  ;;  %v956_v46 = vstv %s2609_s17  ;;  %v1365_v47 = vld [vmem:[%s3119_s15 + $0x30] sm:$0xff]  ;;  %v1366_v32 = vld [vmem:[%s3119_s15 + $0x38] sm:$0xff] }
 0x15a   : > { %v2652_v61 = vsel %vm290_vm6, 0.0, %v812_v10  ;;  %v798_v17 = vadd.f32 %v796_v56, %v792_v44  ;;  %v799_v42 = vadd.f32 %v797_v34, %v793_v52  ;;  %v860_v36 = vadd.f32 %v858_v21, %v741_v57 }
 0x15b   : > { %v842_v11 = vrot.slane %v2647_v12, 7  ;;  %v824_v43 = vrot.slane %v2587_v40, 1  ;;  %v823_v20 = vrot.slane %v2591_v3, 1  ;;  %v859_v54 = vadd.f32 %v857_v41, %v740_v28  ;;  %s1046_s1 = scalar_lea.sflag [#allocation5], %s3158_s3 }
 0x15c   : > { %v3122_v0 = vstv %s2229_s2  ;;  %v917_v23 = vadd.f32 %v915_v59, %v798_v17  ;;  %v918_v29 = vadd.f32 %v916_v53, %v799_v42  ;;  %v939_v51 = vmul.f32 %v1365_v47, %v938_v62 }
 0x15d   : > { %v922_v39 = vmul.f32 %v3122_v0, %v3121_v60  ;;  %v841_v22 = vrot.slane %v2652_v61, 7  ;;  %v940_v5 = vmul.f32 %v1366_v32, %v938_v62  ;;  %v962_v6 = vstv %s2629_s18 }
 0x15e   : > { %v866_v37 = vadd.f32 %v3123_v35, %v860_v36  ;;  %v957_v33 = vmul.f32 %v956_v46, %v3124_v18  ;;  %v3125_v2 = vstv %s3120_s19  ;;  %v865_v62 = vadd.f32 %v3126_v58, %v859_v54 }
 0x15f   : > { %v876_v50 = vmul.f32 %v3125_v2, %v2587_v40  ;;  %v843_v13 = vsel %vm316_vm0, %v841_v22, %v842_v11  ;;  %v844_v49 = vsel %vm316_vm0, %v842_v11, %v841_v22  ;;  %v825_v27 = vsel %vm323_vm1, %v823_v20, %v824_v43  ;;  %v3140_v11 = vld [vmem:[#allocation76_spill] sm:$0xff]  ;;  %v3144_v22 = vld [vmem:[#allocation83_spill] sm:$0xff] }
 0x160   : > { %v826_v30 = vsel %vm323_vm1, %v824_v43, %v823_v20  ;;  %v845_v56 = vsel %vm285_vm4, 0.0, %v844_v49  ;;  %v3127_v15 = vstv %s2177_s29  ;;  %v848_v8 = vrot.slane %v2647_v12, 1  ;;  %v3141_v20 = vld [vmem:[#allocation84_spill] sm:$0xff]  ;;  %s279_s29 = scalar_lea.vmem [#allocation12], %s3158_s3 }
 0x161   : > { %v870_v48 = vmul.f32 %v3127_v15, %v843_v13  ;;  %v3128_v63 = vmov %v3127_v15  ;;  %v923_v21 = vadd.f32 %v2542_v16, %v917_v23  ;;  %v924_v4 = vadd.f32 %v922_v39, %v918_v29  ;;  %s1058_s2 = sshll.u32 %s279_s29, 4  ;;  %s1059_s2 = int_to_ptr.vmem [resolvable:$true] %s1058_s2 }
 0x162   : > { %v869_v25 = vmul.f32 %v3128_v63, %v845_v56  ;;  %v847_v10 = vrot.slane %v2652_v61, 1  ;;  %v3131_v31 = vstv %s2249_s6  ;;  %v3133_v41 = vstv %s2092_s22  ;;  %s3157_s22 = sld [smem:[#allocation22_spill]]  ;;  %s1451_s9 = scalar_lea.vmem %s1059_s2, 16 }
 0x163   : > { %v872_v26 = vadd.f32 %v870_v48, %v866_v37  ;;  %v927_v24 = vmul.f32 %v3131_v31, %v845_v56  ;;  %v3132_v34 = vmov %v3131_v31  ;;  %v934_v19 = vmul.f32 %v3133_v41, %v2587_v40  ;;  %v3153_v31 = vld [vmem:[#allocation85_spill] sm:$0xff]  ;;  %p1452_p3 = scmp.ne.s32.totalorder %s1059_s2, %s1451_s9  ;;  %p1458_p7 = scmp.lt.s32.totalorder %s1059_s2, %s1456_s21 }
 0x164   : > { %v928_v55 = vmul.f32 %v3132_v34, %v843_v13  ;;  %v3134_v59 = vmov %v3125_v2  ;;  %v3135_v14 = vmov %v3133_v41  ;;  %v871_v16 = vadd.f32 %v869_v25, %v865_v62  ;;  %p1459_p10 = scmp.lt.s32.totalorder %s1457_s27, %s1451_s9 }
 0x165   : > { %v875_v57 = vmul.f32 %v3134_v59, %v2591_v3  ;;  %v933_v44 = vmul.f32 %v3135_v14, %v2591_v3  ;;  %v828_v1 = vsel %vm288_vm5, 0.0, %v826_v30  ;;  %v878_v52 = vadd.f32 %v876_v50, %v872_v26  ;;  %p1453_p5 = pnand %p1452_p3, %p3161_p4 }
 0x166   : > { %v929_v9 = vadd.f32 %v927_v24, %v923_v21  ;;  %v930_v53 = vadd.f32 %v928_v55, %v924_v4  ;;  %v3137_v28 = vstv %s3129_s24  ;;  %v3138_v40 = vstv %s3130_s0  ;;  %v3152_v4 = vld [vmem:[#allocation86_spill] sm:$0xff]  ;;  %p1460_p6 = por %p1459_p10, %p1458_p7 }
 0x167   : > { %v893_v17 = vmul.f32 %v3137_v28, %v825_v27  ;;  %v888_v42 = vmul.f32 %v3138_v40, %v2647_v12  ;;  %v877_v36 = vadd.f32 %v875_v57, %v871_v16  ;;  %v958_v43 = vmul.f32 %v956_v46, %v3140_v11  ;;  %p1454_p1 = pneg %p1453_p5 }
 0x168   : > { %v850_v3 = vsel %vm323_vm1, %v848_v8, %v847_v10  ;;  %v884_v54 = vadd.f32 %v3141_v20, %v878_v52  ;;  %v935_v60 = vadd.f32 %v933_v44, %v929_v9  ;;  %v936_v0 = vadd.f32 %v934_v19, %v930_v53  ;;  %s1267_s28 = sshll.u32 %s3157_s22, 4 }
 0x169   : > { %v3142_v39 = vmov %v3137_v28  ;;  %v3143_v29 = vstv %s3136_s11  ;;  %v883_v32 = vadd.f32 %v3144_v22, %v877_v36  ;;  %v3146_v35 = vmov %v3138_v40  ;;  %s2756_s13 = scalar_lea.hbm %s3160_s7, %s1267_s28  ;;  %p1461_p11 = pnand %p1460_p6, %p1454_p1 }
 0x16a   : > { %v894_v23 = vmul.f32 %v3142_v39, %v828_v1  ;;  %v946_v47 = vmul.f32 %v3143_v29, %v2647_v12  ;;  %v887_v37 = vmul.f32 %v3146_v35, %v2652_v61  ;;  %v890_v46 = vadd.f32 %v888_v42, %v884_v54 }
 0x16b   : > { %v941_v18 = vadd.f32 %v939_v51, %v935_v60  ;;  %v942_v2 = vadd.f32 %v940_v5, %v936_v0  ;;  %v3148_v50 = vmov %v3143_v29  ;;  %v3149_v49 = vstv %s3139_s26 }
 0x16c   : > { %v945_v13 = vmul.f32 %v3148_v50, %v2652_v61  ;;  %v951_v58 = vmul.f32 %v3149_v49, %v825_v27  ;;  %v3150_v62 = vmov %v3149_v49  ;;  %v852_v12 = vsel %vm288_vm5, 0.0, %v850_v3  ;;  %v1367_v61 = vld [vmem:[%s3145_s10] sm:$0xff]  ;;  %v3156_v49 = vld [vmem:[#allocation59_spill] sm:$0xff] }
 0x16d   : > { %v952_v30 = vmul.f32 %v3150_v62, %v828_v1  ;;  %v889_v56 = vadd.f32 %v887_v37, %v883_v32  ;;  %v849_v15 = vsel %vm323_vm1, %v847_v10, %v848_v8  ;;  %v948_v51 = vadd.f32 %v946_v47, %v942_v2  ;;  %v1368_v8 = vld [vmem:[%s3145_s10 + $0x8] sm:$0xff] }
 0x16e   : > { %v947_v48 = vadd.f32 %v945_v13, %v941_v18  ;;  %v896_v5 = vadd.f32 %v894_v23, %v890_v46  ;;  %vm997_vm8 = vcmp.eq.s32.totalorder %v1367_v61, 0  ;;  %v3151_v27 = vstv %s3147_s12  ;;  %v3155_v50 = vld [vmem:[#allocation58_spill] sm:$0xff] }
 0x16f   : > { %v895_v63 = vadd.f32 %v893_v17, %v889_v56  ;;  %v906_v25 = vmul.f32 %v3151_v27, %v852_v12  ;;  %v954_v38 = vadd.f32 %v952_v30, %v948_v51  ;;  %v3154_v34 = vmov %v3151_v27  ;;  %v1031_v30 = vpop.xlane.xlu1 %1030 }
 0x170   : > { %v953_v21 = vadd.f32 %v951_v58, %v947_v48  ;;  %v902_v26 = vadd.f32 %v3152_v4, %v896_v5  ;;  %v905_v55 = vmul.f32 %v3154_v34, %v849_v15  ;;  %v963_v7 = vmul.f32 %v962_v6, %v849_v15 }
 0x171   : > { %v901_v24 = vadd.f32 %v3153_v31, %v895_v63  ;;  %vm998_vm9 = vcmp.eq.s32.totalorder %v1368_v8, 0  ;;  %v964_v41 = vmul.f32 %v962_v6, %v852_v12  ;;  %v960_v59 = vadd.f32 %v958_v43, %v954_v38 }
 0x172   : > { %v959_v10 = vadd.f32 %v957_v33, %v953_v21  ;;  %v908_v19 = vadd.f32 %v906_v25, %v902_v26  ;;  %vm1003_vm10 = vcmp.eq.s32.totalorder %v1367_v61, 1  ;;  %vm1004_vm11 = vcmp.eq.s32.totalorder %v1368_v8, 1 }
 0x173   : > { %v907_v57 = vadd.f32 %v905_v55, %v901_v24  ;;  %v966_v44 = vadd.f32 %v964_v41, %v960_v59  ;;  %v1032_v12 = vrot.slane %v1031_v30, 4 }
 0x174   : > { %v965_v14 = vadd.f32 %v963_v7, %v959_v10  ;;  %v1000_v16 = vsel %vm998_vm9, %v908_v19, 0.0 }
 0x175   : > { %v999_v1 = vsel %vm997_vm8, %v907_v57, 0.0  ;;  %v974_v9 = vmax.f32 %v908_v19, %v966_v44  ;;  %v1006_v28 = vsel %vm1004_vm11, %v966_v44, 0.0  ;;  %v1033_v56 = vadd.f32 %v1032_v12, %v1031_v30 }
 0x176   : > { %v973_v52 = vmax.f32 %v907_v57, %v965_v14  ;;  %v1005_v53 = vsel %vm1003_vm10, %v965_v14, 0.0  ;;  %v1008_v40 = vadd.f32 %v1006_v28, %v1000_v16 }
 0x177   : > { %v1007_v17 = vadd.f32 %v1005_v53, %v999_v1  ;;  %v976_v33 = vsub.f32 %v908_v19, %v974_v9  ;;  %v982_v6 = vsub.f32 %v966_v44, %v974_v9  ;;  %v1034_v15 = vrot.slane %v1033_v56, 2 }
 0x178   : > { %v975_v42 = vsub.f32 %v907_v57, %v973_v52  ;;  %v981_v36 = vsub.f32 %v965_v14, %v973_v52 }
 0x179   : > { %v979_v43 = vmul.f32 1.442695, %v976_v33  ;;  %v985_v20 = vmul.f32 1.442695, %v982_v6  ;;  %v1035_v63 = vadd.f32 %v1034_v15, %v1033_v56 }
 0x17a   : > { %v977_v11 = vmul.f32 1.442695, %v975_v42  ;;  %v983_v3 = vmul.f32 1.442695, %v981_v36 }
 0x17b   : > { %v1036_v25 = vrot.slane %v1035_v63, 1 }
 0x17c   : > { %1353 = vpow2.f32 %v977_v11 }
 0x17d   : > { %1355 = vpow2.f32 %v979_v43  ;;  %v1037_v26 = vadd.f32 %v1036_v25, %v1035_v63 }
 0x17e   : > { %1357 = vpow2.f32 %v983_v3 }
 0x17f   : > { %1359 = vpow2.f32 %v985_v20 }
 0x189   : > { %v1354_v54 = vpop.eup %1353 }
 0x18a   : > { %v1356_v60 = vpop.eup %1355 }
 0x18b   : > { %v1358_v0 = vpop.eup %1357 }
 0x18c   : > { %v1360_v39 = vpop.eup %1359  ;;  %v987_v23 = vadd.f32 %v1358_v0, %v1354_v54 }
 0x18d   : > { %v988_v29 = vadd.f32 %v1360_v39, %v1356_v60 }
 0x18e   : > { %1361 = vlog2.f32 %v987_v23 }
 0x18f   : > { %1363 = vlog2.f32 %v988_v29 }
 0x19b   : > { %v1362_v47 = vpop.eup %1361 }
 0x19c   : > { %v1364_v22 = vpop.eup %1363  ;;  %v990_v32 = vmul.f32 0.6931472, %v1362_v47 }
 0x19d   : > { %v992_v35 = vmul.f32 0.6931472, %v1364_v22 }
 0x19e   : > { %v993_v37 = vadd.f32 %v990_v32, %v973_v52 }
 0x19f   : > { %v994_v46 = vadd.f32 %v992_v35, %v974_v9 }
 0x1a0   : > { %v1015_v18 = vsub.f32 %v993_v37, %v1007_v17 }
 0x1a1   : > { %v1016_v2 = vsub.f32 %v994_v46, %v1008_v40 }
 0x1a2   : > { %v1017_v13 = vmul.f32 %v3155_v50, %v1015_v18 }
 0x1a3   : > { %v1018_v58 = vmul.f32 %v3156_v49, %v1016_v2 }
 0x1a5   : > { %v1019_v62 = vadd.f32 %v1018_v58, %v1017_v13 }
 0x1a7   : > { %1020 = vadd.xlane.f32.xlu0 %v1019_v62 }
 0x230   : > { %v1021_v48 = vpop.xlane.xlu0 %1020 }
 0x231   : > { %v1022_v51 = vrot.slane %v1021_v48, 4 }
 0x233   : > { %v1023_v5 = vadd.f32 %v1022_v51, %v1021_v48 }
 0x235   : > { %v1024_v61 = vrot.slane %v1023_v5, 2 }
 0x237   : > { %v1025_v27 = vadd.f32 %v1024_v61, %v1023_v5 }
 0x239   : > { %v1026_v21 = vrot.slane %v1025_v27, 1 }
 0x23b   : > { %v1027_v4 = vadd.f32 %v1026_v21, %v1025_v27 }
 0x23d   : > { %1272 = vpush %v1027_v4 }
 0x23e   : > { %1274 = vpush %v1037_v26 }
 0x26e   : > { %s1273_s25 = spop %1272 }
 0x26f   : > { %v1042_v38 = vstv %s1273_s25  ;;  %s1275_s6 = spop %1274 }
 0x270   : > { %v1040_v31 = vstv %s1275_s6 }
 0x271   : > { %v1041_v24 = vsel %vm1039_vm12, %v1040_v31, 0.0 }
 0x272   : > { %v1043_v34 = vsel %vm289_vm7, %v1042_v38, %v1041_v24 }
 0x273   : > { %1044 = vst [vmem:[%s279_s29] sm:$0x1] %v1043_v34 }
 0x274   : > { %1464 = shalt.err (!%p1461_p11)
}
 0x275   : > { %s1465_s30 = scalar_lea.hbm %s2756_s13, 16  ;;  %s1469_s23 = scalar_lea.hbm %s3160_s7, 32 }
 0x276   : > { %p1466_p9 = scmp.ne.s32.totalorder %s2756_s13, %s1465_s30  ;;  %p1470_p2 = scmp.lt.s32.totalorder %s2756_s13, %s3160_s7 }
 0x277   : > { %p1471_p0 = scmp.lt.s32.totalorder %s1469_s23, %s1465_s30 }
 0x278   : > { %p1467_p8 = pnand %p1466_p9, %p3161_p4 }
 0x279   : > { %p1472_p13 = por %p1471_p0, %p1470_p2 }
 0x27a   : > { %p1468_p12 = pneg %p1467_p8 }
 0x27c   : > { %p1473_p3 = pnand %p1472_p13, %p1468_p12 }
 0x27e   : > { %1476 = shalt.err (!%p1473_p3)
}
 0x27f   : > { %1288 = dma.vmem_to_hbm [thread:$0]  (%p3161_p4), %s1059_s2, 16, %s2756_s13, %s1046_s1  }
 0x280 PF: > { %s3162_s15 = sld [smem:[#allocation18_spill]] }
 0x281   : > { %s3163_s19 = sld [smem:[#allocation26_spill]] }
 0x282   : > { %s3164_s24 = sld [smem:[#allocation21_spill]] }
 0x286   : > { %s1070_s0 = sand.u32 1, %s3162_s15  }
 0x287   : > { %p3165_p5 = scmp.ne.s32.totalorder %s3163_s19, 0  ;;  %s1071_s11 = scalar_lea.sflag [#allocation5], %s1070_s0 }
 0x288   : > { %p3166_p1 = scmp.ge.s32.totalorder %s3164_s24, 2 }
 0x28a   : > { %p1305_p7 = pnand %p3166_p1, %p3165_p5 }
 0x28c   : > { %p1306_p10 = pneg %p1305_p7 }
 0x28e   : > { %1510 = dma.done.wait (%p1306_p10), %s1071_s11, 16  }
 0x28f   : > { %1512 = vsyncadd (%p1306_p10), %s1071_s11, 4294967280  ;;  %s3167_s18 = sld [smem:[#allocation23_spill]] }
 0x290   : > { %s3168_s15 = sld [smem:[#allocation19_spill]] }
 0x291   : > { %s3169_s16 = sld [smem:[#allocation20_spill]] }
 0x292   : > { %s3170_s17 = sld [smem:[#allocation24_spill]] }
 0x295   : > { %p22_p6 = scmp.ge.s32.totalorder %s3167_s18, 4  }
 0x297   :  { %24 = sbr.rel (!%p22_p6) target bundleno = 15 (0xf), region = 108 }
 0x29c   :  { %1075 = vsyncpa [#allocation4], 1 }
 0x29d   :  { %1077 = vsyncpa [#allocation4 + $0x1], 1 }
 0x29e   :  { %1078 = vsyncpa [#allocation11], 1 }
 0x29f   :  { %1080 = vsyncpa [#allocation11 + $0x1], 1 }
 0x2a0   :  { %1081 = vsyncpa [#allocation5], 1 }
 0x2a1   :  { %1083 = vsyncpa [#allocation5 + $0x1], 1 }
 0x2a2   :  { %1084 = vsyncpa [#allocation6], 1 }
 0x2a3   :  { %1086 = vsyncpa [#allocation6 + $0x1], 1 }
 0x2a4   :  { %1087 = vsyncpa [#allocation7], 1 }
 0x2a5   :  { %1089 = vsyncpa [#allocation7 + $0x1], 1 }

</bundles_post_ra>
